<compile_context>
chip_gen: v6e
topology: v6e:2x2x1
jax: 0.10.0
libtpu: 0.0.40
codegen_flags: <defaults>
</compile_context>

<pallas_src>
import functools
import math

import jax
import jax.numpy as jnp
from jax.experimental import pallas as pl
from jax.experimental.pallas import tpu as pltpu


MLP_INPUT_SIZE = 103
LAYERS = (64, 192, 320, 320, 1088, 384)
NUM_LAYERS = len(LAYERS)

_DIMS = (MLP_INPUT_SIZE,) + LAYERS                    # true feature dims
_PADDED_DIMS = (128, 128, 192, 384, 384, 1088, 384)   # lane-friendly padded dims


def _round_up(x: int, m: int) -> int:
    return ((x + m - 1) // m) * m


def _cdiv(a: int, b: int) -> int:
    return (a + b - 1) // b


def _mlp_kernel(x_ref, *refs):
    """Fused 6x (Linear + ReLU) on one batch tile; weights resident in VMEM."""
    w_refs = refs[:NUM_LAYERS]                    # bf16 (in_pad, out_pad)
    b_refs = refs[NUM_LAYERS:2 * NUM_LAYERS]      # f32  (1, out_pad)
    o_ref = refs[2 * NUM_LAYERS]

    h = x_ref[...]                                # (TM, 128) bf16
    for i in range(NUM_LAYERS):
        # bf16 MXU matmul with f32 accumulation.
        acc = jnp.dot(h, w_refs[i][...], preferred_element_type=jnp.float32)
        act = jnp.maximum(acc + b_refs[i][...], 0.0)          # f32 epilogue (VPU)
        if i < NUM_LAYERS - 1:
            h = act.astype(jnp.bfloat16)          # bf16 between layers (less spill)
        else:
            o_ref[...] = act.astype(o_ref.dtype)  # final layer stored f32


def prepare_params(weights, biases):
    """One-time: zero-pad weights/biases to padded dims; weights cast to bf16.

    Call once and reuse the result across forward calls (hoisted out of the
    hot path so no per-call re-padding / re-casting happens).
    """
    wp, bp = [], []
    for i in range(NUM_LAYERS):
        w = jnp.zeros((_PADDED_DIMS[i], _PADDED_DIMS[i + 1]), jnp.bfloat16)
        w = w.at[:_DIMS[i], :_DIMS[i + 1]].set(weights[i].astype(jnp.bfloat16))
        b = jnp.zeros((1, _PADDED_DIMS[i + 1]), jnp.float32)
        b = b.at[:, :_DIMS[i + 1]].set(biases[i].astype(jnp.float32))
        wp.append(w)
        bp.append(b)
    return wp, bp


@functools.partial(jax.jit, static_argnames=("tm",))
def mlp_forward(x, wp, bp, *, tm: int = 1024):
    """x: (B, 103). wp/bp: outputs of prepare_params(). Returns (B, 384) f32."""
    batch = x.shape[0]
    in_pad = _PADDED_DIMS[0]
    out_dim = _PADDED_DIMS[-1]                    # 384 == LAYERS[-1]

    # Balanced, even-count grid (>=2 steps so both v7x TensorCores get work;
    # near-free extra step on single-TC v5e/v6e).  Tile rounded to 16 to match
    # the bf16 (16,128) sublane tile.
    num_tiles = _round_up(max(2, _cdiv(batch, tm)), 2)
    tm_eff = _round_up(_cdiv(batch, num_tiles), 16)
    b_pad = tm_eff * num_tiles

    xp = jnp.zeros((b_pad, in_pad), jnp.bfloat16)
    xp = xp.at[:batch, :MLP_INPUT_SIZE].set(x.astype(jnp.bfloat16))

    grid = (num_tiles,)
    x_spec = pl.BlockSpec((tm_eff, in_pad), lambda i: (i, 0))
    w_specs = [pl.BlockSpec(w.shape, lambda i: (0, 0)) for w in wp]
    b_specs = [pl.BlockSpec(b.shape, lambda i: (0, 0)) for b in bp]
    out_spec = pl.BlockSpec((tm_eff, out_dim), lambda i: (i, 0))

    flops = 2 * b_pad * sum(_PADDED_DIMS[i] * _PADDED_DIMS[i + 1]
                            for i in range(NUM_LAYERS))
    bytes_accessed = (xp.size * 2
                      + sum(w.size * 2 for w in wp)
                      + sum(b.size * 4 for b in bp)
                      + b_pad * out_dim * 4)

    out = pl.pallas_call(
        _mlp_kernel,
        out_shape=jax.ShapeDtypeStruct((b_pad, out_dim), jnp.float32),
        grid=grid,
        in_specs=[x_spec] + w_specs + b_specs,
        out_specs=out_spec,
        compiler_params=pltpu.CompilerParams(
            dimension_semantics=("parallel",),
            vmem_limit_bytes=32 * 1024 * 1024),
        cost_estimate=pl.CostEstimate(flops=flops, transcendentals=0,
                                      bytes_accessed=bytes_accessed),
    )(xp, *wp, *bp)

    return out[:batch]


def init_params(key):
    """Mimic PyTorch nn.Linear defaults: kaiming_uniform(a=sqrt(5)) -> bound=1/sqrt(fan_in)."""
    dims = list(_DIMS)
    weights, biases = [], []
    for i in range(NUM_LAYERS):
        fan_in, fan_out = dims[i], dims[i + 1]
        key, kw, kb = jax.random.split(key, 3)
        bound = 1.0 / math.sqrt(fan_in)
        w = jax.random.uniform(kw, (fan_in, fan_out), jnp.float32,
                               minval=-bound, maxval=bound)
        b = jax.random.uniform(kb, (1, fan_out), jnp.float32,
                               minval=-bound, maxval=bound)
        weights.append(w)
        biases.append(b)
    return weights, biases


def mlp_reference(x, weights, biases, matmul_dtype=jnp.float32):
    h = x.astype(jnp.float32)
    for w, b in zip(weights, biases):
        acc = jnp.dot(h.astype(matmul_dtype), w.astype(matmul_dtype),
                      preferred_element_type=jnp.float32)
        h = jnp.maximum(acc + b, 0.0)
    return h


if __name__ == "__main__":
    # TODO(synk): dropout_rate > 0 (training mode) is not modeled; the default
    # module config (dropout_rate=0.0) has no Dropout layers in forward.
    key = jax.random.PRNGKey(0)
    key, kx = jax.random.split(key)

    batch = 8
    x = jax.random.normal(kx, (batch, MLP_INPUT_SIZE), jnp.float32)
    weights, biases = init_params(key)
    wp, bp = prepare_params(weights, biases)        # one-time padding/cast

    out = jax.block_until_ready(mlp_forward(x, wp, bp))
    assert out.shape == (batch, LAYERS[-1]), out.shape

    ref_bf16 = mlp_reference(x, weights, biases, matmul_dtype=jnp.bfloat16)
    ref_f32 = mlp_reference(x, weights, biases, matmul_dtype=jnp.float32)
    assert jnp.allclose(out, ref_bf16, atol=1e-2, rtol=1e-2), "mismatch vs bf16 reference"
    assert jnp.allclose(out, ref_f32, atol=5e-2, rtol=5e-2), "mismatch vs f32 reference"

    # Exercise the multi-tile grid path (batch not a multiple of the tile).
    key, kx2 = jax.random.split(key)
    x2 = jax.random.normal(kx2, (1000, MLP_INPUT_SIZE), jnp.float32)
    out2 = jax.block_until_ready(mlp_forward(x2, wp, bp))
    ref2 = mlp_reference(x2, weights, biases, matmul_dtype=jnp.bfloat16)
    assert out2.shape == (1000, LAYERS[-1]), out2.shape
    assert jnp.allclose(out2, ref2, atol=1e-2, rtol=1e-2), "mismatch vs reference (tiled)"

    print("KERNEL_OK")
</pallas_src>

<mosaic_0001>
module attributes {stable_mosaic.version = 11 : i64} {
  func.func @_mlp_kernel(%arg0: i32, %arg1: memref<16x128xbf16, #tpu.memory_space<vmem>>, %arg2: memref<128x128xbf16, #tpu.memory_space<vmem>>, %arg3: memref<128x192xbf16, #tpu.memory_space<vmem>>, %arg4: memref<192x384xbf16, #tpu.memory_space<vmem>>, %arg5: memref<384x384xbf16, #tpu.memory_space<vmem>>, %arg6: memref<384x1088xbf16, #tpu.memory_space<vmem>>, %arg7: memref<1088x384xbf16, #tpu.memory_space<vmem>>, %arg8: memref<1x128xf32, #tpu.memory_space<vmem>>, %arg9: memref<1x192xf32, #tpu.memory_space<vmem>>, %arg10: memref<1x384xf32, #tpu.memory_space<vmem>>, %arg11: memref<1x384xf32, #tpu.memory_space<vmem>>, %arg12: memref<1x1088xf32, #tpu.memory_space<vmem>>, %arg13: memref<1x384xf32, #tpu.memory_space<vmem>>, %arg14: memref<16x384xf32, #tpu.memory_space<vmem>>) attributes {dimension_semantics = [#tpu.dimension_semantics<parallel>], iteration_bounds = array<i64: 2>, scalar_prefetch = 0 : i64, scratch_operands = 0 : i64, tpu.core_type = #tpu.core_type<tc>, window_params = [{transform_indices = @transform_0, window_bounds = array<i64: 16, 128>}, {pipeline_mode = #tpu.pipeline_mode<synchronous>, transform_indices = @transform_1, window_bounds = array<i64: 128, 128>}, {pipeline_mode = #tpu.pipeline_mode<synchronous>, transform_indices = @transform_2, window_bounds = array<i64: 128, 192>}, {pipeline_mode = #tpu.pipeline_mode<synchronous>, transform_indices = @transform_3, window_bounds = array<i64: 192, 384>}, {pipeline_mode = #tpu.pipeline_mode<synchronous>, transform_indices = @transform_4, window_bounds = array<i64: 384, 384>}, {pipeline_mode = #tpu.pipeline_mode<synchronous>, transform_indices = @transform_5, window_bounds = array<i64: 384, 1088>}, {pipeline_mode = #tpu.pipeline_mode<synchronous>, transform_indices = @transform_6, window_bounds = array<i64: 1088, 384>}, {pipeline_mode = #tpu.pipeline_mode<synchronous>, transform_indices = @transform_7, window_bounds = array<i64: 1, 128>}, {pipeline_mode = #tpu.pipeline_mode<synchronous>, transform_indices = @transform_8, window_bounds = array<i64: 1, 192>}, {pipeline_mode = #tpu.pipeline_mode<synchronous>, transform_indices = @transform_9, window_bounds = array<i64: 1, 384>}, {pipeline_mode = #tpu.pipeline_mode<synchronous>, transform_indices = @transform_10, window_bounds = array<i64: 1, 384>}, {pipeline_mode = #tpu.pipeline_mode<synchronous>, transform_indices = @transform_11, window_bounds = array<i64: 1, 1088>}, {pipeline_mode = #tpu.pipeline_mode<synchronous>, transform_indices = @transform_12, window_bounds = array<i64: 1, 384>}, {transform_indices = @transform_13, window_bounds = array<i64: 16, 384>}]} {
    %c0 = arith.constant 0 : index
    %c0_0 = arith.constant 0 : index
    %0 = vector.load %arg1[%c0, %c0_0] : memref<16x128xbf16, #tpu.memory_space<vmem>>, vector<16x128xbf16>
    %c0_1 = arith.constant 0 : index
    %c0_2 = arith.constant 0 : index
    %1 = vector.load %arg2[%c0_1, %c0_2] : memref<128x128xbf16, #tpu.memory_space<vmem>>, vector<128x128xbf16>
    %cst = arith.constant dense<0.000000e+00> : vector<16x128xf32>
    %2 = tpu.matmul %0, %1, %cst {dimension_numbers = #tpu.dot_dimension_numbers<[1], [0], [0], [1], [0, 0, 1, 1], [], []>} : vector<16x128xbf16>, vector<128x128xbf16>, vector<16x128xf32> -> vector<16x128xf32>
    %c0_3 = arith.constant 0 : index
    %c0_4 = arith.constant 0 : index
    %3 = vector.load %arg8[%c0_3, %c0_4] : memref<1x128xf32, #tpu.memory_space<vmem>>, vector<1x128xf32>
    %4 = vector.broadcast %3 : vector<1x128xf32> to vector<16x128xf32>
    %5 = arith.addf %2, %4 : vector<16x128xf32>
    %cst_5 = arith.constant 0.000000e+00 : f32
    %6 = vector.broadcast %cst_5 : f32 to vector<16x128xf32>
    %7 = arith.maximumf %5, %6 : vector<16x128xf32>
    %8 = arith.truncf %7 : vector<16x128xf32> to vector<16x128xbf16>
    %c0_6 = arith.constant 0 : index
    %c0_7 = arith.constant 0 : index
    %9 = vector.load %arg3[%c0_6, %c0_7] : memref<128x192xbf16, #tpu.memory_space<vmem>>, vector<128x192xbf16>
    %cst_8 = arith.constant dense<0.000000e+00> : vector<16x192xf32>
    %10 = tpu.matmul %8, %9, %cst_8 {dimension_numbers = #tpu.dot_dimension_numbers<[1], [0], [0], [1], [0, 0, 1, 1], [], []>} : vector<16x128xbf16>, vector<128x192xbf16>, vector<16x192xf32> -> vector<16x192xf32>
    %c0_9 = arith.constant 0 : index
    %c0_10 = arith.constant 0 : index
    %11 = vector.load %arg9[%c0_9, %c0_10] : memref<1x192xf32, #tpu.memory_space<vmem>>, vector<1x192xf32>
    %12 = vector.broadcast %11 : vector<1x192xf32> to vector<16x192xf32>
    %13 = arith.addf %10, %12 : vector<16x192xf32>
    %cst_11 = arith.constant 0.000000e+00 : f32
    %14 = vector.broadcast %cst_11 : f32 to vector<16x192xf32>
    %15 = arith.maximumf %13, %14 : vector<16x192xf32>
    %16 = arith.truncf %15 : vector<16x192xf32> to vector<16x192xbf16>
    %c0_12 = arith.constant 0 : index
    %c0_13 = arith.constant 0 : index
    %17 = vector.load %arg4[%c0_12, %c0_13] : memref<192x384xbf16, #tpu.memory_space<vmem>>, vector<192x384xbf16>
    %cst_14 = arith.constant dense<0.000000e+00> : vector<16x384xf32>
    %18 = tpu.matmul %16, %17, %cst_14 {dimension_numbers = #tpu.dot_dimension_numbers<[1], [0], [0], [1], [0, 0, 1, 1], [], []>} : vector<16x192xbf16>, vector<192x384xbf16>, vector<16x384xf32> -> vector<16x384xf32>
    %c0_15 = arith.constant 0 : index
    %c0_16 = arith.constant 0 : index
    %19 = vector.load %arg10[%c0_15, %c0_16] : memref<1x384xf32, #tpu.memory_space<vmem>>, vector<1x384xf32>
    %20 = vector.broadcast %19 : vector<1x384xf32> to vector<16x384xf32>
    %21 = arith.addf %18, %20 : vector<16x384xf32>
    %cst_17 = arith.constant 0.000000e+00 : f32
    %22 = vector.broadcast %cst_17 : f32 to vector<16x384xf32>
    %23 = arith.maximumf %21, %22 : vector<16x384xf32>
    %24 = arith.truncf %23 : vector<16x384xf32> to vector<16x384xbf16>
    %c0_18 = arith.constant 0 : index
    %c0_19 = arith.constant 0 : index
    %25 = vector.load %arg5[%c0_18, %c0_19] : memref<384x384xbf16, #tpu.memory_space<vmem>>, vector<384x384xbf16>
    %cst_20 = arith.constant dense<0.000000e+00> : vector<16x384xf32>
    %26 = tpu.matmul %24, %25, %cst_20 {dimension_numbers = #tpu.dot_dimension_numbers<[1], [0], [0], [1], [0, 0, 1, 1], [], []>} : vector<16x384xbf16>, vector<384x384xbf16>, vector<16x384xf32> -> vector<16x384xf32>
    %c0_21 = arith.constant 0 : index
    %c0_22 = arith.constant 0 : index
    %27 = vector.load %arg11[%c0_21, %c0_22] : memref<1x384xf32, #tpu.memory_space<vmem>>, vector<1x384xf32>
    %28 = vector.broadcast %27 : vector<1x384xf32> to vector<16x384xf32>
    %29 = arith.addf %26, %28 : vector<16x384xf32>
    %cst_23 = arith.constant 0.000000e+00 : f32
    %30 = vector.broadcast %cst_23 : f32 to vector<16x384xf32>
    %31 = arith.maximumf %29, %30 : vector<16x384xf32>
    %32 = arith.truncf %31 : vector<16x384xf32> to vector<16x384xbf16>
    %c0_24 = arith.constant 0 : index
    %c0_25 = arith.constant 0 : index
    %33 = vector.load %arg6[%c0_24, %c0_25] : memref<384x1088xbf16, #tpu.memory_space<vmem>>, vector<384x1088xbf16>
    %cst_26 = arith.constant dense<0.000000e+00> : vector<16x1088xf32>
    %34 = tpu.matmul %32, %33, %cst_26 {dimension_numbers = #tpu.dot_dimension_numbers<[1], [0], [0], [1], [0, 0, 1, 1], [], []>} : vector<16x384xbf16>, vector<384x1088xbf16>, vector<16x1088xf32> -> vector<16x1088xf32>
    %c0_27 = arith.constant 0 : index
    %c0_28 = arith.constant 0 : index
    %35 = vector.load %arg12[%c0_27, %c0_28] : memref<1x1088xf32, #tpu.memory_space<vmem>>, vector<1x1088xf32>
    %36 = vector.broadcast %35 : vector<1x1088xf32> to vector<16x1088xf32>
    %37 = arith.addf %34, %36 : vector<16x1088xf32>
    %cst_29 = arith.constant 0.000000e+00 : f32
    %38 = vector.broadcast %cst_29 : f32 to vector<16x1088xf32>
    %39 = arith.maximumf %37, %38 : vector<16x1088xf32>
    %40 = arith.truncf %39 : vector<16x1088xf32> to vector<16x1088xbf16>
    %c0_30 = arith.constant 0 : index
    %c0_31 = arith.constant 0 : index
    %41 = vector.load %arg7[%c0_30, %c0_31] : memref<1088x384xbf16, #tpu.memory_space<vmem>>, vector<1088x384xbf16>
    %cst_32 = arith.constant dense<0.000000e+00> : vector<16x384xf32>
    %42 = tpu.matmul %40, %41, %cst_32 {dimension_numbers = #tpu.dot_dimension_numbers<[1], [0], [0], [1], [0, 0, 1, 1], [], []>} : vector<16x1088xbf16>, vector<1088x384xbf16>, vector<16x384xf32> -> vector<16x384xf32>
    %c0_33 = arith.constant 0 : index
    %c0_34 = arith.constant 0 : index
    %43 = vector.load %arg13[%c0_33, %c0_34] : memref<1x384xf32, #tpu.memory_space<vmem>>, vector<1x384xf32>
    %44 = vector.broadcast %43 : vector<1x384xf32> to vector<16x384xf32>
    %45 = arith.addf %42, %44 : vector<16x384xf32>
    %cst_35 = arith.constant 0.000000e+00 : f32
    %46 = vector.broadcast %cst_35 : f32 to vector<16x384xf32>
    %47 = arith.maximumf %45, %46 : vector<16x384xf32>
    %c0_36 = arith.constant 0 : index
    %c0_37 = arith.constant 0 : index
    %48 = vector.load %arg14[%c0_36, %c0_37] : memref<16x384xf32, #tpu.memory_space<vmem>>, vector<16x384xf32>
    tpu.vector_store %arg14[%c0_36, %c0_37], %47 {strides = array<i32>} : memref<16x384xf32, #tpu.memory_space<vmem>>, vector<16x384xf32>,
    return
  }
  func.func @transform_0(%arg0: i32) -> (i32, i32) {
    %c0_i32 = arith.constant 0 : i32
    %c0_i32_0 = arith.constant 0 : i32
    return %arg0, %c0_i32 : i32, i32
  }
  func.func @transform_1(%arg0: i32) -> (i32, i32) {
    %c0_i32 = arith.constant 0 : i32
    %c0_i32_0 = arith.constant 0 : i32
    %c0_i32_1 = arith.constant 0 : i32
    return %c0_i32, %c0_i32_0 : i32, i32
  }
  func.func @transform_2(%arg0: i32) -> (i32, i32) {
    %c0_i32 = arith.constant 0 : i32
    %c0_i32_0 = arith.constant 0 : i32
    %c0_i32_1 = arith.constant 0 : i32
    return %c0_i32, %c0_i32_0 : i32, i32
  }
  func.func @transform_3(%arg0: i32) -> (i32, i32) {
    %c0_i32 = arith.constant 0 : i32
    %c0_i32_0 = arith.constant 0 : i32
    %c0_i32_1 = arith.constant 0 : i32
    return %c0_i32, %c0_i32_0 : i32, i32
  }
  func.func @transform_4(%arg0: i32) -> (i32, i32) {
    %c0_i32 = arith.constant 0 : i32
    %c0_i32_0 = arith.constant 0 : i32
    %c0_i32_1 = arith.constant 0 : i32
    return %c0_i32, %c0_i32_0 : i32, i32
  }
  func.func @transform_5(%arg0: i32) -> (i32, i32) {
    %c0_i32 = arith.constant 0 : i32
    %c0_i32_0 = arith.constant 0 : i32
    %c0_i32_1 = arith.constant 0 : i32
    return %c0_i32, %c0_i32_0 : i32, i32
  }
  func.func @transform_6(%arg0: i32) -> (i32, i32) {
    %c0_i32 = arith.constant 0 : i32
    %c0_i32_0 = arith.constant 0 : i32
    %c0_i32_1 = arith.constant 0 : i32
    return %c0_i32, %c0_i32_0 : i32, i32
  }
  func.func @transform_7(%arg0: i32) -> (i32, i32) {
    %c0_i32 = arith.constant 0 : i32
    %c0_i32_0 = arith.constant 0 : i32
    %c0_i32_1 = arith.constant 0 : i32
    return %c0_i32, %c0_i32_0 : i32, i32
  }
  func.func @transform_8(%arg0: i32) -> (i32, i32) {
    %c0_i32 = arith.constant 0 : i32
    %c0_i32_0 = arith.constant 0 : i32
    %c0_i32_1 = arith.constant 0 : i32
    return %c0_i32, %c0_i32_0 : i32, i32
  }
  func.func @transform_9(%arg0: i32) -> (i32, i32) {
    %c0_i32 = arith.constant 0 : i32
    %c0_i32_0 = arith.constant 0 : i32
    %c0_i32_1 = arith.constant 0 : i32
    return %c0_i32, %c0_i32_0 : i32, i32
  }
  func.func @transform_10(%arg0: i32) -> (i32, i32) {
    %c0_i32 = arith.constant 0 : i32
    %c0_i32_0 = arith.constant 0 : i32
    %c0_i32_1 = arith.constant 0 : i32
    return %c0_i32, %c0_i32_0 : i32, i32
  }
  func.func @transform_11(%arg0: i32) -> (i32, i32) {
    %c0_i32 = arith.constant 0 : i32
    %c0_i32_0 = arith.constant 0 : i32
    %c0_i32_1 = arith.constant 0 : i32
    return %c0_i32, %c0_i32_0 : i32, i32
  }
  func.func @transform_12(%arg0: i32) -> (i32, i32) {
    %c0_i32 = arith.constant 0 : i32
    %c0_i32_0 = arith.constant 0 : i32
    %c0_i32_1 = arith.constant 0 : i32
    return %c0_i32, %c0_i32_0 : i32, i32
  }
  func.func @transform_13(%arg0: i32) -> (i32, i32) {
    %c0_i32 = arith.constant 0 : i32
    %c0_i32_0 = arith.constant 0 : i32
    return %arg0, %c0_i32 : i32, i32
  }
}

</mosaic_0001>

<bundles_post_ra>
// kernel: mlp_forward.1
= control target key start
LH: loop header
LB: loop body
LE: loop exit
PB: predicated region body
PF: predicated region fallthrough
CT: control target
= control target key end

     0   :  { %s7131_s25 = smov 0   ;;  %s9000_s0 = inlined_call_operand.vmem [shape: bf16[32,128], index: 0, kind: input, shape index: {}]   ;;  %s9001_s1 = inlined_call_operand.vmem [shape: bf16[128,128], index: 1, kind: input, shape index: {}]   ;;  %s9002_s2 = inlined_call_operand.vmem [shape: bf16[128,192], index: 2, kind: input, shape index: {}]   ;;  %s9003_s3 = inlined_call_operand.vmem [shape: bf16[192,384], index: 3, kind: input, shape index: {}]   ;;  %s9004_s4 = inlined_call_operand.vmem [shape: bf16[384,384], index: 4, kind: input, shape index: {}]   ;;  %s9005_s5 = inlined_call_operand.vmem [shape: bf16[384,1088], index: 5, kind: input, shape index: {}]   ;;  %s9006_s6 = inlined_call_operand.vmem [shape: bf16[1088,384], index: 6, kind: input, shape index: {}]   ;;  %s9007_s7 = inlined_call_operand.vmem [shape: f32[1,128], index: 7, kind: input, shape index: {}]   ;;  %s9008_s8 = inlined_call_operand.vmem [shape: f32[1,192], index: 8, kind: input, shape index: {}]   ;;  %s9009_s9 = inlined_call_operand.vmem [shape: f32[1,384], index: 9, kind: input, shape index: {}]   ;;  %s9010_s10 = inlined_call_operand.vmem [shape: f32[1,384], index: 10, kind: input, shape index: {}]   ;;  %s9011_s11 = inlined_call_operand.vmem [shape: f32[1,1088], index: 11, kind: input, shape index: {}]   ;;  %s9012_s12 = inlined_call_operand.vmem [shape: f32[1,384], index: 12, kind: input, shape index: {}]   ;;  %s9013_s13 = inlined_call_operand.vmem [shape: f32[32,384], index: 13, kind: output, shape index: {}]  }
   0x1 LB: > { %s5471_s26 = sadd.s32 4294967295, %s7056_s25   ;;  %p5475_p0 = scmp.ge.s32.totalorder %s7056_s25, 1  ;;  %s7056_s25 = sphi %s7131_s25, %s23_s25  }
   0x2   : > { %p388_p1 = scmp.lt.s32.totalorder %s7056_s25, 3 }
   0x4   : > { %p389_p2 = pnand %p5475_p0, %p388_p1 }
   0x5   : > { %s5476_s14 = sshll.u32 (!%p389_p2), %s5471_s26, 1 }
   0x6   : > { %392 = sbr.rel (%p389_p2) target bundleno = 1574 (0x626), region = 72  ;;  %p434_p3 = scmp.lt.s32.totalorder (!%p389_p2), %s5476_s14, 3 }
   0xb   : > { %v6289_v0 = vld [vmem:[%s9001_s1 + $0x38] sm:$0xff]   ;;  %v7058_v1 = vmov 0.0   ;;  %v6290_v2 = vld [vmem:[%s9001_s1 + $0x30] sm:$0xff]   ;;  %vm7059_vm0 = vmmov 0   ;;  %s9015_s14 = smov (!%p434_p3, %s5476_s14), 3  ;;  %v6291_v3 = vld [vmem:[%s9001_s1 + $0x28] sm:$0xff]  }
   0xc   : > { %6205 = vmatprep.subr.bf16.mxu0 %v7058_v1  ;;  %6221 = vmatprep.mubr.msk.bf16.mxu0 %vm7059_vm0, %v7058_v1  ;;  %s5477_s17 = sshll.u32 %s9015_s14, 2  ;;  %v6298_v4 = vld [vmem:[%s9002_s2 + $0x74] ss:$8 sps:$4 sm:$0xff]   ;;  %v6292_v5 = vld [vmem:[%s9001_s1 + $0x20] sm:$0xff]   ;;  %v6300_v6 = vld [vmem:[%s9002_s2 + $0x70] ss:$8 sps:$4 sm:$0xff]  }
   0xd   : > { %6206 = vmatpush3.bf16.msra.mxu0 %v6289_v0  ;;  %s7159_s20 = scalar_lea.vmem %s9000_s0, %s5477_s17  ;;  %678 = vmatprep.subr.bf16.mxu1 %v6298_v4  ;;  %v6301_v7 = vld [vmem:[%s9002_s2 + $0x64] ss:$8 sps:$4 sm:$0xff]   ;;  %v6303_v8 = vld [vmem:[%s9002_s2 + $0x60] ss:$8 sps:$4 sm:$0xff]   ;;  %v6304_v9 = vld [vmem:[%s9002_s2 + $0x54] ss:$8 sps:$4 sm:$0xff]  }
   0xe   : > { %6207 = vmatprep.subr.bf16.mxu0 %v7058_v1  ;;  %679 = vmatpush1.bf16.msra.mxu1 %v6300_v6  ;;  %v6293_v10 = vld [vmem:[%s9001_s1 + $0x18] sm:$0xff]   ;;  %v6294_v11 = vld [vmem:[%s9001_s1 + $0x10] sm:$0xff]   ;;  %v6307_v13 = vld [vmem:[%s9002_s2 + $0x44] ss:$8 sps:$4 sm:$0xff]   ;;  %v7060_v26 = vmov 0   ;;  %vm984_vm1 = vcmask 523264  }
   0xf   : > { %680 = vmatprep.subr.bf16.mxu1 %v6301_v7  ;;  %v6306_v12 = vld [vmem:[%s9002_s2 + $0x50] ss:$8 sps:$4 sm:$0xff]   ;;  %v6309_v14 = vld [vmem:[%s9002_s2 + $0x40] ss:$8 sps:$4 sm:$0xff]   ;;  %v6310_v15 = vld [vmem:[%s9002_s2 + $0x34] ss:$8 sps:$4 sm:$0xff]   ;;  %710 = vmatprep.mubr.bf16.mxu1 %v7060_v26 }
  0x10   : > { %v6295_v16 = vld [vmem:[%s9001_s1 + $0x8] sm:$0xff]   ;;  %v6312_v17 = vld [vmem:[%s9002_s2 + $0x30] ss:$8 sps:$4 sm:$0xff]   ;;  %v6296_v19 = vld [vmem:[%s9001_s1] sm:$0xff]   ;;  %s6277_s26 = smul.u32 24, %s9015_s14 }
  0x11   : > { %6208 = vmatpush3.bf16.msra.mxu0 %v6290_v2  ;;  %v6313_v18 = vld [vmem:[%s9002_s2 + $0x24] ss:$8 sps:$4 sm:$0xff]   ;;  %v6315_v21 = vld [vmem:[%s9002_s2 + $0x20] ss:$8 sps:$4 sm:$0xff]   ;;  %v6316_v22 = vld [vmem:[%s9002_s2 + $0x14] ss:$8 sps:$4 sm:$0xff]  }
  0x12   : > { %6209 = vmatprep.subr.bf16.mxu0 %v7058_v1  ;;  %681 = vmatpush1.bf16.msra.mxu1 %v6303_v8  ;;  %v6297_v20 = vld [vmem:[%s7159_s20] sm:$0xff]   ;;  %v6318_v23 = vld [vmem:[%s9002_s2 + $0x10] ss:$8 sps:$4 sm:$0xff]   ;;  %v6322_v27 = vld [vmem:[%s9003_s3 + $0xa8] ss:$12 sps:$4 sm:$0xff]   ;;  %s8988_s29 = scalar_lea.vmem %s9013_s13, %s6277_s26 }
  0x13   : > { %682 = vmatprep.subr.bf16.mxu1 %v6304_v9  ;;  %v6319_v24 = vld [vmem:[%s9002_s2 + $0x4] ss:$8 sps:$4 sm:$0xff]   ;;  %v6321_v25 = vld [vmem:[%s9002_s2] ss:$8 sps:$4 sm:$0xff]   ;;  %v6326_v30 = vld [vmem:[%s9003_s3 + $0x90] ss:$12 sps:$4 sm:$0xff]  }
  0x14   : > { %v6324_v28 = vld [vmem:[%s9003_s3 + $0xac] ss:$12 sps:$4 sm:$0xff]   ;;  %v6328_v29 = vld [vmem:[%s9003_s3 + $0x94] ss:$12 sps:$4 sm:$0xff]   ;;  %v6332_v31 = vld [vmem:[%s9003_s3 + $0x7c] ss:$12 sps:$4 sm:$0xff]  }
  0x15   : > { %6210 = vmatpush3.bf16.msra.mxu0 %v6291_v3  ;;  %v6330_v32 = vld [vmem:[%s9003_s3 + $0x78] ss:$12 sps:$4 sm:$0xff]   ;;  %v6334_v34 = vld [vmem:[%s9003_s3 + $0x60] ss:$12 sps:$4 sm:$0xff]   ;;  %v6338_v36 = vld [vmem:[%s9003_s3 + $0x48] ss:$12 sps:$4 sm:$0xff]  }
  0x16   : > { %6211 = vmatprep.subr.bf16.mxu0 %v7058_v1  ;;  %683 = vmatpush1.bf16.msra.mxu1 %v6306_v12  ;;  %v6336_v33 = vld [vmem:[%s9003_s3 + $0x64] ss:$12 sps:$4 sm:$0xff]   ;;  %v6340_v35 = vld [vmem:[%s9003_s3 + $0x4c] ss:$12 sps:$4 sm:$0xff]   ;;  %v6344_v37 = vld [vmem:[%s9003_s3 + $0x34] ss:$12 sps:$4 sm:$0xff]   ;;  %v588_v12 = vlaneseq }
  0x17   : > { %684 = vmatprep.subr.bf16.mxu1 %v6307_v13  ;;  %v6342_v38 = vld [vmem:[%s9003_s3 + $0x30] ss:$12 sps:$4 sm:$0xff]   ;;  %v6346_v40 = vld [vmem:[%s9003_s3 + $0x18] ss:$12 sps:$4 sm:$0xff]   ;;  %v6350_v42 = vld [vmem:[%s9003_s3] ss:$12 sps:$4 sm:$0xff]  }
  0x18   : > { %v6348_v39 = vld [vmem:[%s9003_s3 + $0x1c] ss:$12 sps:$4 sm:$0xff]   ;;  %v6352_v41 = vld [vmem:[%s9003_s3 + $0x4] ss:$12 sps:$4 sm:$0xff]   ;;  %v6356_v43 = vld [vmem:[%s9003_s3 + $0x10c] ss:$12 sps:$4 sm:$0xff]  }
  0x19   : > { %6212 = vmatpush3.bf16.msra.mxu0 %v6292_v5  ;;  %v6354_v44 = vld [vmem:[%s9003_s3 + $0x108] ss:$12 sps:$4 sm:$0xff]   ;;  %v5480_v45 = vld [vmem:[%s9007_s7] ss:$0 sm:$0xff]  ;;  %v6325_v52 = vld [vmem:[%s9003_s3 + $0xb0] ss:$12 sps:$4 sm:$0xff]  }
  0x1a   : > { %6213 = vmatprep.subr.bf16.mxu0 %v7058_v1  ;;  %685 = vmatpush1.bf16.msra.mxu1 %v6309_v14  ;;  %v6329_v56 = vld [vmem:[%s9003_s3 + $0x98] ss:$12 sps:$4 sm:$0xff]   ;;  %v6333_v57 = vld [vmem:[%s9003_s3 + $0x80] ss:$12 sps:$4 sm:$0xff]   ;;  %v6337_v58 = vld [vmem:[%s9003_s3 + $0x68] ss:$12 sps:$4 sm:$0xff]  }
  0x1b   : > { %686 = vmatprep.subr.bf16.mxu1 %v6310_v15  ;;  %v6341_v59 = vld [vmem:[%s9003_s3 + $0x50] ss:$12 sps:$4 sm:$0xff]   ;;  %v6345_v60 = vld [vmem:[%s9003_s3 + $0x38] ss:$12 sps:$4 sm:$0xff]   ;;  %v6349_v61 = vld [vmem:[%s9003_s3 + $0x20] ss:$12 sps:$4 sm:$0xff]  }
  0x1c   : > { %v6353_v62 = vld [vmem:[%s9003_s3 + $0x8] ss:$12 sps:$4 sm:$0xff]   ;;  %v6357_v63 = vld [vmem:[%s9003_s3 + $0x110] ss:$12 sps:$4 sm:$0xff]   ;;  %v6361_v3 = vld [vmem:[%s9003_s3 + $0xf8] ss:$12 sps:$4 sm:$0xff]  }
  0x1d   : > { %6214 = vmatpush3.bf16.msra.mxu0 %v6293_v10  ;;  %v6360_v0 = vld [vmem:[%s9003_s3 + $0xf4] ss:$12 sps:$4 sm:$0xff]   ;;  %v6358_v2 = vld [vmem:[%s9003_s3 + $0xf0] ss:$12 sps:$4 sm:$0xff]   ;;  %v6362_v5 = vld [vmem:[%s9003_s3 + $0xd8] ss:$12 sps:$4 sm:$0xff]  }
  0x1e   : > { %6215 = vmatprep.subr.bf16.mxu0 %v7058_v1  ;;  %687 = vmatpush1.bf16.msra.mxu1 %v6312_v17  ;;  %v6364_v4 = vld [vmem:[%s9003_s3 + $0xdc] ss:$12 sps:$4 sm:$0xff]   ;;  %v6365_v6 = vld [vmem:[%s9003_s3 + $0xe0] ss:$12 sps:$4 sm:$0xff]   ;;  %v6368_v7 = vld [vmem:[%s9003_s3 + $0xc4] ss:$12 sps:$4 sm:$0xff]  }
  0x1f   : > { %688 = vmatprep.subr.bf16.mxu1 %v6313_v18  ;;  %v6366_v8 = vld [vmem:[%s9003_s3 + $0xc0] ss:$12 sps:$4 sm:$0xff]   ;;  %v6369_v9 = vld [vmem:[%s9003_s3 + $0xc8] ss:$12 sps:$4 sm:$0xff]   ;;  %v7360_v13 = vshrl.u32 %v588_v12, 7 }
  0x20   : > { %v6372_v10 = vld [vmem:[%s9004_s4 + $0xac] ss:$12 sps:$4 sm:$0xff]  }
  0x21   : > { %6216 = vmatpush3.bf16.msra.mxu0 %v6294_v11  ;;  %v6396_v11 = vld [vmem:[%s9004_s4 + $0x22c] ss:$12 sps:$4 sm:$0xff]   ;;  %v7363_v14 = vsub.s32 1, %v7360_v13  ;;  %v7366_v15 = vsub.s32 0, %v7360_v13 }
  0x22   : > { %6217 = vmatprep.subr.bf16.mxu0 %v7058_v1  ;;  %689 = vmatpush1.bf16.msra.mxu1 %v6315_v21  ;;  %v6433_v12 = vld [vmem:[%s9004_s4 + $0xd8] ss:$12 sps:$4 sm:$0xff]  }
  0x23   : > { %690 = vmatprep.subr.bf16.mxu1 %v6316_v22 }
  0x25   : > { %6218 = vmatpush3.bf16.msra.mxu0 %v6295_v16  ;;  %v586_v16 = vld [vmem:[%s9008_s8] sm:$0x3] }
  0x26   : > { %6219 = vmatprep.subr.bf16.mxu0 %v7058_v1  ;;  %691 = vmatpush1.bf16.msra.mxu1 %v6318_v23  ;;  %v595_v18 = vrot.slane %v586_v16, %v7363_v14 }
  0x27   : > { %692 = vmatprep.subr.bf16.mxu1 %v6319_v24 }
  0x29   : > { %6220 = vmatpush3.bf16.msra.mxu0 %v6296_v19  ;;  %v591_v19 = vrot.slane %v586_v16, %v7366_v15  ;;  %v6438_v16 = vld [vmem:[%s9004_s4 + $0x184] ss:$12 sps:$4 sm:$0xff]  }
  0x2a   : > { %693 = vmatpush1.bf16.msra.mxu1 %v6321_v25  ;;  %988 = vmatprep.subr.bf16.mxu0 %v6324_v28 }
  0x2b   : > { %1031 = vmatprep.subr.bf16.mxu1 %v7060_v26 }
  0x2c   : > { %6222 = vmatmul.mubr.bf16.vlgmr.msra.gmra.mxu0 %v6297_v20 }
  0x2d   : > { %989 = vmatpush1.bf16.msra.mxu0 %v6322_v27 }
  0x2e   : > { %990 = vmatprep.subr.bf16.mxu0 %v6328_v29 }
  0x31   : > { %991 = vmatpush1.bf16.msra.mxu0 %v6326_v30 }
  0x32   : > { %992 = vmatprep.subr.bf16.mxu0 %v6332_v31 }
  0x35   : > { %993 = vmatpush1.bf16.msra.mxu0 %v6330_v32 }
  0x36   : > { %994 = vmatprep.subr.bf16.mxu0 %v6336_v33  ;;  %v6370_v33 = vld [vmem:[%s9004_s4 + $0xa8] ss:$12 sps:$4 sm:$0xff]  }
  0x39   : > { %995 = vmatpush1.bf16.msra.mxu0 %v6334_v34  ;;  %v6394_v34 = vld [vmem:[%s9004_s4 + $0x228] ss:$12 sps:$4 sm:$0xff]  }
  0x3a   : > { %996 = vmatprep.subr.bf16.mxu0 %v6340_v35 }
  0x3d   : > { %997 = vmatpush1.bf16.msra.mxu0 %v6338_v36  ;;  %v6375_v36 = vld [vmem:[%s9004_s4 + $0x94] ss:$12 sps:$4 sm:$0xff]  }
  0x3e   : > { %998 = vmatprep.subr.bf16.mxu0 %v6344_v37  ;;  %v6402_v37 = vld [vmem:[%s9004_s4 + $0x214] ss:$12 sps:$4 sm:$0xff]  }
  0x41   : > { %999 = vmatpush1.bf16.msra.mxu0 %v6342_v38  ;;  %v6373_v38 = vld [vmem:[%s9004_s4 + $0x90] ss:$12 sps:$4 sm:$0xff]  }
  0x42   : > { %1000 = vmatprep.subr.bf16.mxu0 %v6348_v39  ;;  %v6400_v39 = vld [vmem:[%s9004_s4 + $0x210] ss:$12 sps:$4 sm:$0xff]  }
  0x45   : > { %1001 = vmatpush1.bf16.msra.mxu0 %v6346_v40  ;;  %v6378_v40 = vld [vmem:[%s9004_s4 + $0x7c] ss:$12 sps:$4 sm:$0xff]  }
  0x46   : > { %1002 = vmatprep.subr.bf16.mxu0 %v6352_v41  ;;  %v6408_v41 = vld [vmem:[%s9004_s4 + $0x1fc] ss:$12 sps:$4 sm:$0xff]  }
  0x49   : > { %1003 = vmatpush1.bf16.msra.mxu0 %v6350_v42  ;;  %v6376_v42 = vld [vmem:[%s9004_s4 + $0x78] ss:$12 sps:$4 sm:$0xff]  }
  0x4a   : > { %1012 = vmatprep.subr.bf16.mxu0 %v6356_v43  ;;  %v6406_v43 = vld [vmem:[%s9004_s4 + $0x1f8] ss:$12 sps:$4 sm:$0xff]  }
  0x4d   : > { %1013 = vmatpush2.bf16.msra.mxu0 %v6354_v44  ;;  %v6381_v44 = vld [vmem:[%s9004_s4 + $0x64] ss:$12 sps:$4 sm:$0xff]  }
  0x4e   : > { %1014 = vmatprep.subr.bf16.mxu0 %v6360_v0  ;;  %v6411_v0 = vld [vmem:[%s9004_s4 + $0x13c] ss:$12 sps:$4 sm:$0xff]  }
  0x51   : > { %1015 = vmatpush2.bf16.msra.mxu0 %v6358_v2  ;;  %v6409_v2 = vld [vmem:[%s9004_s4 + $0x138] ss:$12 sps:$4 sm:$0xff]  }
  0x52   : > { %1016 = vmatprep.subr.bf16.mxu0 %v6364_v4  ;;  %v6415_v4 = vld [vmem:[%s9004_s4 + $0x120] ss:$12 sps:$4 sm:$0xff]  }
  0x55   : > { %1017 = vmatpush2.bf16.msra.mxu0 %v6362_v5  ;;  %v6423_v5 = vld [vmem:[%s9004_s4 + $0x10c] ss:$12 sps:$4 sm:$0xff]  }
  0x56   : > { %1018 = vmatprep.subr.bf16.mxu0 %v6368_v7  ;;  %v6429_v7 = vld [vmem:[%s9004_s4 + $0xf4] ss:$12 sps:$4 sm:$0xff]  }
  0x59   : > { %1019 = vmatpush2.bf16.msra.mxu0 %v6366_v8  ;;  %v6427_v8 = vld [vmem:[%s9004_s4 + $0xf0] ss:$12 sps:$4 sm:$0xff]  }
  0x5a   : > { %1578 = vmatprep.subr.bf16.mxu0 %v6372_v10  ;;  %v6430_v10 = vld [vmem:[%s9004_s4 + $0x198] ss:$12 sps:$4 sm:$0xff]  }
  0xec   : > { %v560_v46 = vpop.f32.mrf.mxu0 }
  0xed   : > { %v561_v48 = vadd.f32 %v5480_v45, %v560_v46  ;;  %v6379_v46 = vld [vmem:[%s9004_s4 + $0x60] ss:$12 sps:$4 sm:$0xff]  }
  0xee   : > { %v6223_v47 = vpop.f32.mrf.mxu0 }
  0xef   : > { %v567_v53 = vmax.f32 %v561_v48, 0.0  ;;  %v6412_v47 = vld [vmem:[%s9004_s4 + $0x1e0] ss:$12 sps:$4 sm:$0xff]  }
  0xf0   : > { %v563_v49 = vpop.f32.mrf.mxu0  ;;  %v6384_v48 = vld [vmem:[%s9004_s4 + $0x4c] ss:$12 sps:$4 sm:$0xff]  }
  0xf1   : > { %v564_v50 = vadd.f32 %v5480_v45, %v563_v49  ;;  %v6414_v45 = vld [vmem:[%s9004_s4 + $0x1e4] ss:$12 sps:$4 sm:$0xff]   ;;  %v6420_v49 = vld [vmem:[%s9004_s4 + $0x1cc] ss:$12 sps:$4 sm:$0xff]  }
  0xf2   : > { %v6224_v51 = vpop.f32.mrf.mxu0 }
  0xf3   : > { %v568_v54 = vmax.f32 %v564_v50, 0.0  ;;  %v6382_v50 = vld [vmem:[%s9004_s4 + $0x48] ss:$12 sps:$4 sm:$0xff]  }
  0xf4   : > { %v6418_v51 = vld [vmem:[%s9004_s4 + $0x1c8] ss:$12 sps:$4 sm:$0xff]  }
  0xf5   : > { %v569_v55 = vpack.c.bf16 %v568_v54, %v567_v53  ;;  %v6426_v53 = vld [vmem:[%s9004_s4 + $0x1b4] ss:$12 sps:$4 sm:$0xff]   ;;  %v6385_v54 = vld [vmem:[%s9004_s4 + $0x30] ss:$12 sps:$4 sm:$0xff]  }
  0xf7   : > { %711 = vmatmul.mubr.bf16.vlgmr.msra.gmra.mxu1 %v569_v55  ;;  %v6424_v55 = vld [vmem:[%s9004_s4 + $0x1b0] ss:$12 sps:$4 sm:$0xff]  }
  0xf8   : > { %1032 = vmatpush1.bf16.msra.mxu1 %v6325_v52  ;;  %v6387_v52 = vld [vmem:[%s9004_s4 + $0x34] ss:$12 sps:$4 sm:$0xff]  }
  0xf9   : > { %1033 = vmatprep.subr.bf16.mxu1 %v7060_v26 }
  0xfc   : > { %1034 = vmatpush1.bf16.msra.mxu1 %v6329_v56  ;;  %v6390_v56 = vld [vmem:[%s9004_s4 + $0x1c] ss:$12 sps:$4 sm:$0xff]  }
  0xfd   : > { %1035 = vmatprep.subr.bf16.mxu1 %v7060_v26 }
 0x100   : > { %1036 = vmatpush1.bf16.msra.mxu1 %v6333_v57  ;;  %v6388_v57 = vld [vmem:[%s9004_s4 + $0x18] ss:$12 sps:$4 sm:$0xff]  }
 0x101   : > { %1037 = vmatprep.subr.bf16.mxu1 %v7060_v26 }
 0x104   : > { %1038 = vmatpush1.bf16.msra.mxu1 %v6337_v58  ;;  %v6393_v58 = vld [vmem:[%s9004_s4 + $0x4] ss:$12 sps:$4 sm:$0xff]  }
 0x105   : > { %1039 = vmatprep.subr.bf16.mxu1 %v7060_v26 }
 0x108   : > { %1040 = vmatpush1.bf16.msra.mxu1 %v6341_v59  ;;  %v6391_v59 = vld [vmem:[%s9004_s4] ss:$12 sps:$4 sm:$0xff]  }
 0x109   : > { %1041 = vmatprep.subr.bf16.mxu1 %v7060_v26 }
 0x10c   : > { %1042 = vmatpush1.bf16.msra.mxu1 %v6345_v60  ;;  %v6399_v60 = vld [vmem:[%s9004_s4 + $0x16c] ss:$12 sps:$4 sm:$0xff]  }
 0x10d   : > { %1043 = vmatprep.subr.bf16.mxu1 %v7060_v26 }
 0x110   : > { %1044 = vmatpush1.bf16.msra.mxu1 %v6349_v61  ;;  %v6397_v61 = vld [vmem:[%s9004_s4 + $0x168] ss:$12 sps:$4 sm:$0xff]  }
 0x111   : > { %1045 = vmatprep.subr.bf16.mxu1 %v7060_v26 }
 0x114   : > { %1046 = vmatpush1.bf16.msra.mxu1 %v6353_v62  ;;  %v6405_v62 = vld [vmem:[%s9004_s4 + $0x154] ss:$12 sps:$4 sm:$0xff]  }
 0x115   : > { %1055 = vmatprep.subr.bf16.mxu1 %v7060_v26 }
 0x118   : > { %1056 = vmatpush2.bf16.msra.mxu1 %v6357_v63  ;;  %v6403_v63 = vld [vmem:[%s9004_s4 + $0x150] ss:$12 sps:$4 sm:$0xff]  }
 0x119   : > { %1057 = vmatprep.subr.bf16.mxu1 %v7060_v26 }
 0x11c   : > { %1058 = vmatpush2.bf16.msra.mxu1 %v6361_v3  ;;  %v6417_v3 = vld [vmem:[%s9004_s4 + $0x124] ss:$12 sps:$4 sm:$0xff]  }
 0x11d   : > { %1059 = vmatprep.subr.bf16.mxu1 %v7060_v26 }
 0x120   : > { %1060 = vmatpush2.bf16.msra.mxu1 %v6365_v6  ;;  %v6421_v6 = vld [vmem:[%s9004_s4 + $0x108] ss:$12 sps:$4 sm:$0xff]  }
 0x121   : > { %1061 = vmatprep.subr.bf16.mxu1 %v7060_v26 }
 0x124   : > { %1062 = vmatpush2.bf16.msra.mxu1 %v6369_v9  ;;  %v6432_v9 = vld [vmem:[%s9004_s4 + $0x19c] ss:$12 sps:$4 sm:$0xff]  }
 0x125   : > { %1621 = vmatprep.subr.bf16.mxu1 %v6396_v11  ;;  %v6435_v11 = vld [vmem:[%s9004_s4 + $0xdc] ss:$12 sps:$4 sm:$0xff]  }
 0x1b7   : > { %v712_v17 = vpop.f32.mrf.mxu1 }
 0x1b8   : > { %v713_v24 = vadd.f32 %v712_v17, %v591_v19  ;;  %v6436_v17 = vld [vmem:[%s9004_s4 + $0x180] ss:$12 sps:$4 sm:$0xff]  }
 0x1b9   : > { %v714_v20 = vpop.f32.mrf.mxu1 }
 0x1ba   : > { %v715_v22 = vadd.f32 %v714_v20, %v595_v18  ;;  %v721_v31 = vmax.f32 %v713_v24, 0.0  ;;  %v6442_v20 = vld [vmem:[%s9004_s4 + $0x170] ss:$12 sps:$4 sm:$0xff]  }
 0x1bb   : > { %v716_v21 = vpop.f32.mrf.mxu1 }
 0x1bc   : > { %v717_v23 = vadd.f32 %v716_v21, %v591_v19  ;;  %v722_v29 = vmax.f32 %v715_v22, 0.0  ;;  %v6439_v19 = vld [vmem:[%s9004_s4 + $0xc0] ss:$12 sps:$4 sm:$0xff]   ;;  %v7519_v21 = vsub.s32 2, %v7360_v13 }
 0x1bd   : > { %v718_v25 = vpop.f32.mrf.mxu1  ;;  %v775_v22 = vld [vmem:[%s9009_s9] sm:$0x7] }
 0x1be   : > { %v719_v27 = vadd.f32 %v718_v25, %v595_v18  ;;  %v723_v28 = vmax.f32 %v717_v23, 0.0  ;;  %v6441_v18 = vld [vmem:[%s9004_s4 + $0xc4] ss:$12 sps:$4 sm:$0xff]   ;;  %v788_v23 = vrot.slane %v775_v22, %v7519_v21 }
 0x1c0   : > { %v724_v30 = vmax.f32 %v719_v27, 0.0  ;;  %v725_v35 = vpack.c.bf16 %v723_v28, %v721_v31  ;;  %v784_v27 = vrot.slane %v775_v22, %v7363_v14  ;;  %v780_v28 = vrot.slane %v775_v22, %v7366_v15  ;;  %v6480_v22 = vld [vmem:[%s9005_s5 + $0xdc] ss:$36 sps:$4 sm:$0xff]  }
 0x1c2   : > { %v726_v32 = vpack.c.bf16 %v724_v30, %v722_v29 }
 0x1c4   : > { %5542 = vmatprep.mubr.msk.bf16.mxu0 %vm984_vm1, %v726_v32  ;;  %5543 = vmatprep.mubr.msk.bf16.mxu1 %vm984_vm1, %v726_v32 }
 0x1c5   : > { %1021 = vmatmul.mubr.bf16.vlgmr.msra.gmra.mxu0 %v725_v35  ;;  %1064 = vmatmul.mubr.bf16.vlgmr.msra.gmra.mxu1 %v725_v35 }
 0x1c6   : > { %1579 = vmatpush1.bf16.msra.mxu0 %v6370_v33  ;;  %1622 = vmatpush1.bf16.msra.mxu1 %v6394_v34 }
 0x1c7   : > { %1580 = vmatprep.subr.bf16.mxu0 %v6375_v36  ;;  %1623 = vmatprep.subr.bf16.mxu1 %v6402_v37 }
 0x1c8   : > { %1653 = vmatprep.mubr.bf16.mxu1 %v7060_v26 }
 0x1ca   : > { %1581 = vmatpush1.bf16.msra.mxu0 %v6373_v38  ;;  %1624 = vmatpush1.bf16.msra.mxu1 %v6400_v39 }
 0x1cb   : > { %1582 = vmatprep.subr.bf16.mxu0 %v6378_v40  ;;  %1625 = vmatprep.subr.bf16.mxu1 %v6408_v41 }
 0x1ce   : > { %1583 = vmatpush1.bf16.msra.mxu0 %v6376_v42  ;;  %1626 = vmatpush1.bf16.msra.mxu1 %v6406_v43 }
 0x1cf   : > { %1584 = vmatprep.subr.bf16.mxu0 %v6381_v44  ;;  %1627 = vmatprep.subr.bf16.mxu1 %v6414_v45  ;;  %v6443_v44 = vld [vmem:[%s9004_s4 + $0xb0] ss:$12 sps:$4 sm:$0xff]  }
 0x1d2   : > { %1585 = vmatpush1.bf16.msra.mxu0 %v6379_v46  ;;  %1628 = vmatpush1.bf16.msra.mxu1 %v6412_v47 }
 0x1d3   : > { %1586 = vmatprep.subr.bf16.mxu0 %v6384_v48  ;;  %1629 = vmatprep.subr.bf16.mxu1 %v6420_v49  ;;  %v6444_v49 = vld [vmem:[%s9004_s4 + $0x158] ss:$12 sps:$4 sm:$0xff]  }
 0x1d6   : > { %1587 = vmatpush1.bf16.msra.mxu0 %v6382_v50  ;;  %1630 = vmatpush1.bf16.msra.mxu1 %v6418_v51  ;;  %v6445_v51 = vld [vmem:[%s9004_s4 + $0x230] ss:$12 sps:$4 sm:$0xff]  }
 0x1d7   : > { %1588 = vmatprep.subr.bf16.mxu0 %v6387_v52  ;;  %1631 = vmatprep.subr.bf16.mxu1 %v6426_v53  ;;  %v6446_v53 = vld [vmem:[%s9004_s4 + $0x98] ss:$12 sps:$4 sm:$0xff]  }
 0x1da   : > { %1589 = vmatpush1.bf16.msra.mxu0 %v6385_v54  ;;  %1632 = vmatpush1.bf16.msra.mxu1 %v6424_v55  ;;  %v6447_v54 = vld [vmem:[%s9004_s4 + $0x140] ss:$12 sps:$4 sm:$0xff]   ;;  %v6448_v55 = vld [vmem:[%s9004_s4 + $0x218] ss:$12 sps:$4 sm:$0xff]  }
 0x1db   : > { %1590 = vmatprep.subr.bf16.mxu0 %v6390_v56  ;;  %1633 = vmatprep.subr.bf16.mxu1 %v6432_v9  ;;  %v6449_v56 = vld [vmem:[%s9004_s4 + $0x80] ss:$12 sps:$4 sm:$0xff]  }
 0x1dc   : > { %v6468_v9 = vld [vmem:[%s9005_s5 + $0x1fc] ss:$36 sps:$4 sm:$0xff]  }
 0x1de   : > { %1591 = vmatpush1.bf16.msra.mxu0 %v6388_v57  ;;  %1634 = vmatpush1.bf16.msra.mxu1 %v6430_v10  ;;  %v6450_v57 = vld [vmem:[%s9004_s4 + $0x128] ss:$12 sps:$4 sm:$0xff]  }
 0x1df   : > { %1592 = vmatprep.subr.bf16.mxu0 %v6393_v58  ;;  %1635 = vmatprep.subr.bf16.mxu1 %v6438_v16  ;;  %v6451_v58 = vld [vmem:[%s9004_s4 + $0x200] ss:$12 sps:$4 sm:$0xff]   ;;  %v6465_v10 = vld [vmem:[%s9004_s4 + $0x188] ss:$12 sps:$4 sm:$0xff]  }
 0x1e0   : > { %v6469_v16 = vld [vmem:[%s9005_s5 + $0x1b0] ss:$36 sps:$4 sm:$0xff]  }
 0x1e2   : > { %1593 = vmatpush1.bf16.msra.mxu0 %v6391_v59  ;;  %1636 = vmatpush1.bf16.msra.mxu1 %v6436_v17  ;;  %v6452_v59 = vld [vmem:[%s9004_s4 + $0x68] ss:$12 sps:$4 sm:$0xff]   ;;  %v6474_v17 = vld [vmem:[%s9005_s5 + $0x16c] ss:$36 sps:$4 sm:$0xff]  }
 0x1e3   : > { %1594 = vmatprep.subr.bf16.mxu0 %v6399_v60  ;;  %6050 = vmatprep.subr.bf16.mxu1 %v6442_v20  ;;  %v6453_v60 = vld [vmem:[%s9004_s4 + $0x110] ss:$12 sps:$4 sm:$0xff]   ;;  %v6475_v20 = vld [vmem:[%s9005_s5 + $0x120] ss:$36 sps:$4 sm:$0xff]  }
 0x1e6   : > { %1595 = vmatpush2.bf16.msra.mxu0 %v6397_v61  ;;  %v6454_v61 = vld [vmem:[%s9004_s4 + $0x1e8] ss:$12 sps:$4 sm:$0xff]  }
 0x1e7   : > { %1596 = vmatprep.subr.bf16.mxu0 %v6405_v62  ;;  %v6455_v62 = vld [vmem:[%s9004_s4 + $0x50] ss:$12 sps:$4 sm:$0xff]  }
 0x1ea   : > { %1597 = vmatpush2.bf16.msra.mxu0 %v6403_v63  ;;  %v6456_v63 = vld [vmem:[%s9004_s4 + $0xf8] ss:$12 sps:$4 sm:$0xff]  }
 0x1eb   : > { %1598 = vmatprep.subr.bf16.mxu0 %v6411_v0  ;;  %v6457_v0 = vld [vmem:[%s9004_s4 + $0x1d0] ss:$12 sps:$4 sm:$0xff]  }
 0x1ee   : > { %1599 = vmatpush2.bf16.msra.mxu0 %v6409_v2  ;;  %v6458_v2 = vld [vmem:[%s9004_s4 + $0x38] ss:$12 sps:$4 sm:$0xff]  }
 0x1ef   : > { %1600 = vmatprep.subr.bf16.mxu0 %v6417_v3  ;;  %v6459_v3 = vld [vmem:[%s9004_s4 + $0xe0] ss:$12 sps:$4 sm:$0xff]  }
 0x1f2   : > { %1601 = vmatpush2.bf16.msra.mxu0 %v6415_v4  ;;  %v6460_v4 = vld [vmem:[%s9004_s4 + $0x1b8] ss:$12 sps:$4 sm:$0xff]  }
 0x1f3   : > { %1602 = vmatprep.subr.bf16.mxu0 %v6423_v5  ;;  %v6461_v5 = vld [vmem:[%s9004_s4 + $0x20] ss:$12 sps:$4 sm:$0xff]  }
 0x1f6   : > { %1603 = vmatpush2.bf16.msra.mxu0 %v6421_v6  ;;  %v6462_v6 = vld [vmem:[%s9004_s4 + $0xc8] ss:$12 sps:$4 sm:$0xff]  }
 0x1f7   : > { %1604 = vmatprep.subr.bf16.mxu0 %v6429_v7  ;;  %v6463_v7 = vld [vmem:[%s9004_s4 + $0x1a0] ss:$12 sps:$4 sm:$0xff]  }
 0x1fa   : > { %1605 = vmatpush2.bf16.msra.mxu0 %v6427_v8  ;;  %v6464_v8 = vld [vmem:[%s9004_s4 + $0x8] ss:$12 sps:$4 sm:$0xff]  }
 0x1fb   : > { %1606 = vmatprep.subr.bf16.mxu0 %v6435_v11  ;;  %v6466_v11 = vld [vmem:[%s9005_s5 + $0x1f8] ss:$36 sps:$4 sm:$0xff]  }
 0x1fe   : > { %1607 = vmatpush2.bf16.msra.mxu0 %v6433_v12  ;;  %v6471_v12 = vld [vmem:[%s9005_s5 + $0x1b4] ss:$36 sps:$4 sm:$0xff]  }
 0x1ff   : > { %1608 = vmatprep.subr.bf16.mxu0 %v6441_v18  ;;  %v6472_v18 = vld [vmem:[%s9005_s5 + $0x168] ss:$36 sps:$4 sm:$0xff]  }
 0x202   : > { %1609 = vmatpush2.bf16.msra.mxu0 %v6439_v19  ;;  %v6477_v19 = vld [vmem:[%s9005_s5 + $0x124] ss:$36 sps:$4 sm:$0xff]  }
 0x203   : > { %6225 = vmatprep.subr.bf16.mxu0 %v7058_v1 }
 0x285   : > { %v1022_v24 = vpop.f32.mrf.mxu0  ;;  %v1065_v25 = vpop.f32.mrf.mxu1 }
 0x286   : > { %v1066_v31 = vadd.f32 %v1065_v25, %v788_v23  ;;  %v1023_v37 = vadd.f32 %v1022_v24, %v780_v28  ;;  %v6483_v24 = vld [vmem:[%s9005_s5 + $0x94] ss:$36 sps:$4 sm:$0xff]  }
 0x287   : > { %v1024_v29 = vpop.f32.mrf.mxu0  ;;  %v1067_v30 = vpop.f32.mrf.mxu1  ;;  %v6481_v25 = vld [vmem:[%s9005_s5 + $0x90] ss:$36 sps:$4 sm:$0xff]  }
 0x288   : > { %v1025_v34 = vadd.f32 %v1024_v29, %v784_v27  ;;  %v1074_v40 = vmax.f32 %v1066_v31, 0.0  ;;  %v1072_v48 = vmax.f32 %v1023_v37, 0.0  ;;  %v6489_v29 = vld [vmem:[%s9005_s5 + $0x4] ss:$36 sps:$4 sm:$0xff]   ;;  %v6492_v31 = vld [vmem:[%s9005_s5 + $0x43c] ss:$36 sps:$4 sm:$0xff]  }
 0x289   : > { %v1026_v32 = vpop.f32.mrf.mxu0  ;;  %v1068_v33 = vpop.f32.mrf.mxu1  ;;  %v6487_v30 = vld [vmem:[%s9005_s5] ss:$36 sps:$4 sm:$0xff]  }
 0x28a   : > { %v1027_v35 = vadd.f32 %v1026_v32, %v780_v28  ;;  %v1069_v36 = vadd.f32 %v1068_v33, %v788_v23  ;;  %v1073_v45 = vmax.f32 %v1025_v34, 0.0  ;;  %v6478_v23 = vld [vmem:[%s9005_s5 + $0xd8] ss:$36 sps:$4 sm:$0xff]   ;;  %v6484_v28 = vld [vmem:[%s9005_s5 + $0x48] ss:$36 sps:$4 sm:$0xff]  }
 0x28b   : > { %v1028_v38 = vpop.f32.mrf.mxu0  ;;  %v1070_v39 = vpop.f32.mrf.mxu1  ;;  %v6490_v32 = vld [vmem:[%s9005_s5 + $0x438] ss:$36 sps:$4 sm:$0xff]   ;;  %v6493_v34 = vld [vmem:[%s9005_s5 + $0x3f0] ss:$36 sps:$4 sm:$0xff]   ;;  %v6501_v37 = vld [vmem:[%s9005_s5 + $0x364] ss:$36 sps:$4 sm:$0xff]  }
 0x28c   : > { %v1077_v41 = vmax.f32 %v1069_v36, 0.0  ;;  %v1029_v42 = vadd.f32 %v1028_v38, %v784_v27  ;;  %v1075_v43 = vmax.f32 %v1027_v35, 0.0  ;;  %v6486_v27 = vld [vmem:[%s9005_s5 + $0x4c] ss:$36 sps:$4 sm:$0xff]   ;;  %v6495_v33 = vld [vmem:[%s9005_s5 + $0x3f4] ss:$36 sps:$4 sm:$0xff]  }
 0x28d   : > { %v6498_v35 = vld [vmem:[%s9005_s5 + $0x3ac] ss:$36 sps:$4 sm:$0xff]   ;;  %v6499_v38 = vld [vmem:[%s9005_s5 + $0x360] ss:$36 sps:$4 sm:$0xff]  }
 0x28e   : > { %v7530_v46 = vpack.c.bf16 %v1077_v41, %v1074_v40  ;;  %v1076_v47 = vmax.f32 %v1029_v42, 0.0  ;;  %v1078_v52 = vpack.c.bf16 %v1075_v43, %v1072_v48  ;;  %v6496_v36 = vld [vmem:[%s9005_s5 + $0x3a8] ss:$36 sps:$4 sm:$0xff]   ;;  %v6504_v39 = vld [vmem:[%s9005_s5 + $0x31c] ss:$36 sps:$4 sm:$0xff]  }
 0x28f   : > { %v6502_v40 = vld [vmem:[%s9005_s5 + $0x318] ss:$36 sps:$4 sm:$0xff]   ;;  %v6508_v48 = vld [vmem:[%s9005_s5 + $0x288] ss:$36 sps:$4 sm:$0xff]  }
 0x290   : > { %v1079_v50 = vpack.c.bf16 %v1076_v47, %v1073_v45  ;;  %1654 = vmatmul.mubr.bf16.vlgmr.msra.gmra.mxu1 %v7530_v46  ;;  %v6507_v41 = vld [vmem:[%s9005_s5 + $0x2d4] ss:$36 sps:$4 sm:$0xff]   ;;  %v6516_v42 = vld [vmem:[%s9005_s5 + $0x67c] ss:$36 sps:$4 sm:$0xff]   ;;  %v6510_v45 = vld [vmem:[%s9005_s5 + $0x28c] ss:$36 sps:$4 sm:$0xff]  }
 0x291   : > { %6051 = vmatpush3.bf16.msra.mxu1 %v6443_v44  ;;  %v6514_v43 = vld [vmem:[%s9005_s5 + $0x678] ss:$36 sps:$4 sm:$0xff]   ;;  %v6505_v44 = vld [vmem:[%s9005_s5 + $0x2d0] ss:$36 sps:$4 sm:$0xff]  }
 0x292   : > { %1610 = vmatprep.mubr.bf16.mxu0 %v1079_v50  ;;  %1696 = vmatprep.mubr.bf16.mxu1 %v1079_v50  ;;  %v6520_v47 = vld [vmem:[%s9005_s5 + $0x630] ss:$36 sps:$4 sm:$0xff]  }
 0x293   : > { %1611 = vmatmul.mubr.bf16.vlgmr.msra.gmra.mxu0 %v1078_v52  ;;  %6052 = vmatprep.subr.bf16.mxu1 %v6444_v49  ;;  %v6526_v49 = vld [vmem:[%s9005_s5 + $0x5e8] ss:$36 sps:$4 sm:$0xff]  }
 0x294   : > { %6226 = vmatpush3.bf16.msra.mxu0 %v6445_v51  ;;  %6241 = vmatprep.mubr.msk.bf16.mxu0 %vm7059_vm0, %v7058_v1  ;;  %v6528_v50 = vld [vmem:[%s9005_s5 + $0x5ec] ss:$36 sps:$4 sm:$0xff]   ;;  %v6513_v51 = vld [vmem:[%s9005_s5 + $0x244] ss:$36 sps:$4 sm:$0xff]  }
 0x295   : > { %6053 = vmatpush3.bf16.msra.mxu1 %v6446_v53  ;;  %6227 = vmatprep.subr.bf16.mxu0 %v7058_v1  ;;  %v6532_v53 = vld [vmem:[%s9005_s5 + $0x5a0] ss:$36 sps:$4 sm:$0xff]  }
 0x296   : > { %6054 = vmatprep.subr.bf16.mxu1 %v6447_v54  ;;  %v6534_v54 = vld [vmem:[%s9005_s5 + $0x5a4] ss:$36 sps:$4 sm:$0xff]  }
 0x298   : > { %6228 = vmatpush3.bf16.msra.mxu0 %v6448_v55  ;;  %v6519_v55 = vld [vmem:[%s9005_s5 + $0x684] ss:$36 sps:$4 sm:$0xff]  }
 0x299   : > { %6055 = vmatpush3.bf16.msra.mxu1 %v6449_v56  ;;  %6229 = vmatprep.subr.bf16.mxu0 %v7058_v1  ;;  %v6540_v56 = vld [vmem:[%s9005_s5 + $0x55c] ss:$36 sps:$4 sm:$0xff]  }
 0x29a   : > { %6056 = vmatprep.subr.bf16.mxu1 %v6450_v57  ;;  %v6538_v57 = vld [vmem:[%s9005_s5 + $0x558] ss:$36 sps:$4 sm:$0xff]  }
 0x29c   : > { %6230 = vmatpush3.bf16.msra.mxu0 %v6451_v58  ;;  %v6546_v58 = vld [vmem:[%s9005_s5 + $0x514] ss:$36 sps:$4 sm:$0xff]  }
 0x29d   : > { %6057 = vmatpush3.bf16.msra.mxu1 %v6452_v59  ;;  %6231 = vmatprep.subr.bf16.mxu0 %v7058_v1  ;;  %v6544_v59 = vld [vmem:[%s9005_s5 + $0x510] ss:$36 sps:$4 sm:$0xff]  }
 0x29e   : > { %6058 = vmatprep.subr.bf16.mxu1 %v6453_v60  ;;  %v6552_v60 = vld [vmem:[%s9005_s5 + $0x4cc] ss:$36 sps:$4 sm:$0xff]  }
 0x2a0   : > { %6232 = vmatpush3.bf16.msra.mxu0 %v6454_v61  ;;  %v6550_v61 = vld [vmem:[%s9005_s5 + $0x4c8] ss:$36 sps:$4 sm:$0xff]  }
 0x2a1   : > { %6059 = vmatpush3.bf16.msra.mxu1 %v6455_v62  ;;  %6233 = vmatprep.subr.bf16.mxu0 %v7058_v1  ;;  %v6558_v62 = vld [vmem:[%s9005_s5 + $0x484] ss:$36 sps:$4 sm:$0xff]  }
 0x2a2   : > { %6060 = vmatprep.subr.bf16.mxu1 %v6456_v63  ;;  %v6556_v63 = vld [vmem:[%s9005_s5 + $0x480] ss:$36 sps:$4 sm:$0xff]  }
 0x2a4   : > { %6234 = vmatpush3.bf16.msra.mxu0 %v6457_v0  ;;  %v6564_v0 = vld [vmem:[%s9005_s5 + $0x204] ss:$36 sps:$4 sm:$0xff]  }
 0x2a5   : > { %6061 = vmatpush3.bf16.msra.mxu1 %v6458_v2  ;;  %6235 = vmatprep.subr.bf16.mxu0 %v7058_v1 }
 0x2a6   : > { %6062 = vmatprep.subr.bf16.mxu1 %v6459_v3  ;;  %v1177_v3 = vld [vmem:[%s9010_s10] sm:$0x7] }
 0x2a8   : > { %6236 = vmatpush3.bf16.msra.mxu0 %v6460_v4  ;;  %v1186_v4 = vrot.slane %v1177_v3, %v7363_v14 }
 0x2a9   : > { %6063 = vmatpush3.bf16.msra.mxu1 %v6461_v5  ;;  %6237 = vmatprep.subr.bf16.mxu0 %v7058_v1 }
 0x2aa   : > { %6064 = vmatprep.subr.bf16.mxu1 %v6462_v6  ;;  %v1182_v6 = vrot.slane %v1177_v3, %v7366_v15 }
 0x2ac   : > { %6238 = vmatpush3.bf16.msra.mxu0 %v6463_v7 }
 0x2ad   : > { %6065 = vmatpush3.bf16.msra.mxu1 %v6464_v8  ;;  %6239 = vmatprep.subr.bf16.mxu0 %v7058_v1 }
 0x2ae   : > { %3148 = vmatprep.subr.bf16.mxu1 %v6468_v9 }
 0x2b0   : > { %1697 = vmatmul.mubr.bf16.vlgmr.msra.gmra.mxu1 %v1078_v52  ;;  %6240 = vmatpush3.bf16.msra.mxu0 %v6465_v10  ;;  %v6511_v52 = vld [vmem:[%s9005_s5 + $0x240] ss:$36 sps:$4 sm:$0xff]  }
 0x2b1   : > { %3149 = vmatpush1.bf16.msra.mxu1 %v6466_v11  ;;  %3191 = vmatprep.subr.bf16.mxu0 %v6516_v42  ;;  %v1190_v42 = vrot.slane %v1177_v3, %v7519_v21 }
 0x2b2   : > { %3150 = vmatprep.subr.bf16.mxu1 %v6471_v12 }
 0x2b3   : > { %6242 = vmatmul.mubr.bf16.vlgmr.msra.gmra.mxu0 %v7530_v46  ;;  %v6522_v46 = vld [vmem:[%s9005_s5 + $0x634] ss:$36 sps:$4 sm:$0xff]  }
 0x2b4   : > { %3223 = vmatprep.mubr.bf16.mxu0 %v7060_v26  ;;  %3192 = vmatpush1.bf16.msra.mxu0 %v6514_v43  ;;  %v6549_v43 = vld [vmem:[%s9005_s5 + $0x51c] ss:$36 sps:$4 sm:$0xff]  }
 0x2b5   : > { %3151 = vmatpush1.bf16.msra.mxu1 %v6469_v16  ;;  %3193 = vmatprep.subr.bf16.mxu0 %v6522_v46 }
 0x2b6   : > { %3152 = vmatprep.subr.bf16.mxu1 %v6474_v17 }
 0x2b8   : > { %3194 = vmatpush1.bf16.msra.mxu0 %v6520_v47 }
 0x2b9   : > { %3153 = vmatpush1.bf16.msra.mxu1 %v6472_v18  ;;  %3195 = vmatprep.subr.bf16.mxu0 %v6528_v50 }
 0x2ba   : > { %3154 = vmatprep.subr.bf16.mxu1 %v6477_v19 }
 0x2bc   : > { %3196 = vmatpush1.bf16.msra.mxu0 %v6526_v49 }
 0x2bd   : > { %3155 = vmatpush1.bf16.msra.mxu1 %v6475_v20  ;;  %3197 = vmatprep.subr.bf16.mxu0 %v6534_v54 }
 0x2be   : > { %3156 = vmatprep.subr.bf16.mxu1 %v6480_v22 }
 0x2c0   : > { %3198 = vmatpush1.bf16.msra.mxu0 %v6532_v53 }
 0x2c1   : > { %3157 = vmatpush1.bf16.msra.mxu1 %v6478_v23  ;;  %3199 = vmatprep.subr.bf16.mxu0 %v6540_v56 }
 0x2c2   : > { %3158 = vmatprep.subr.bf16.mxu1 %v6483_v24 }
 0x2c4   : > { %3200 = vmatpush1.bf16.msra.mxu0 %v6538_v57 }
 0x2c5   : > { %3159 = vmatpush1.bf16.msra.mxu1 %v6481_v25  ;;  %3201 = vmatprep.subr.bf16.mxu0 %v6546_v58 }
 0x2c6   : > { %3160 = vmatprep.subr.bf16.mxu1 %v6486_v27 }
 0x2c8   : > { %3202 = vmatpush1.bf16.msra.mxu0 %v6544_v59  ;;  %v6561_v59 = vld [vmem:[%s9005_s5 + $0x48c] ss:$36 sps:$4 sm:$0xff]  }
 0x2c9   : > { %3161 = vmatpush1.bf16.msra.mxu1 %v6484_v28  ;;  %3203 = vmatprep.subr.bf16.mxu0 %v6552_v60 }
 0x2ca   : > { %3162 = vmatprep.subr.bf16.mxu1 %v6489_v29 }
 0x2cc   : > { %3204 = vmatpush1.bf16.msra.mxu0 %v6550_v61  ;;  %v6559_v61 = vld [vmem:[%s9005_s5 + $0x488] ss:$36 sps:$4 sm:$0xff]  }
 0x2cd   : > { %3163 = vmatpush1.bf16.msra.mxu1 %v6487_v30  ;;  %3205 = vmatprep.subr.bf16.mxu0 %v6558_v62 }
 0x2ce   : > { %3164 = vmatprep.subr.bf16.mxu1 %v6492_v31  ;;  %v6517_v31 = vld [vmem:[%s9005_s5 + $0x680] ss:$36 sps:$4 sm:$0xff]  }
 0x2d0   : > { %3206 = vmatpush1.bf16.msra.mxu0 %v6556_v63 }
 0x2d1   : > { %3165 = vmatpush2.bf16.msra.mxu1 %v6490_v32  ;;  %3234 = vmatprep.subr.bf16.mxu0 %v6564_v0  ;;  %v6567_v0 = vld [vmem:[%s9005_s5 + $0x20c] ss:$36 sps:$4 sm:$0xff]  }
 0x2d2   : > { %3166 = vmatprep.subr.bf16.mxu1 %v6495_v33  ;;  %v6525_v33 = vld [vmem:[%s9005_s5 + $0x63c] ss:$36 sps:$4 sm:$0xff]  }
 0x2d5   : > { %3167 = vmatpush2.bf16.msra.mxu1 %v6493_v34  ;;  %v6523_v34 = vld [vmem:[%s9005_s5 + $0x638] ss:$36 sps:$4 sm:$0xff]  }
 0x2d6   : > { %3168 = vmatprep.subr.bf16.mxu1 %v6498_v35  ;;  %v6531_v35 = vld [vmem:[%s9005_s5 + $0x5f4] ss:$36 sps:$4 sm:$0xff]  }
 0x2d9   : > { %3169 = vmatpush2.bf16.msra.mxu1 %v6496_v36  ;;  %v6529_v36 = vld [vmem:[%s9005_s5 + $0x5f0] ss:$36 sps:$4 sm:$0xff]  }
 0x2da   : > { %3170 = vmatprep.subr.bf16.mxu1 %v6501_v37  ;;  %v6537_v37 = vld [vmem:[%s9005_s5 + $0x5ac] ss:$36 sps:$4 sm:$0xff]  }
 0x2dd   : > { %3171 = vmatpush2.bf16.msra.mxu1 %v6499_v38  ;;  %v6535_v38 = vld [vmem:[%s9005_s5 + $0x5a8] ss:$36 sps:$4 sm:$0xff]  }
 0x2de   : > { %3172 = vmatprep.subr.bf16.mxu1 %v6504_v39  ;;  %v6543_v39 = vld [vmem:[%s9005_s5 + $0x564] ss:$36 sps:$4 sm:$0xff]  }
 0x2e1   : > { %3173 = vmatpush2.bf16.msra.mxu1 %v6502_v40 }
 0x2e2   : > { %3174 = vmatprep.subr.bf16.mxu1 %v6507_v41  ;;  %v6541_v41 = vld [vmem:[%s9005_s5 + $0x560] ss:$36 sps:$4 sm:$0xff]  }
 0x2e5   : > { %3175 = vmatpush2.bf16.msra.mxu1 %v6505_v44 }
 0x2e6   : > { %3176 = vmatprep.subr.bf16.mxu1 %v6510_v45 }
 0x2e9   : > { %3177 = vmatpush2.bf16.msra.mxu1 %v6508_v48  ;;  %v6547_v48 = vld [vmem:[%s9005_s5 + $0x518] ss:$36 sps:$4 sm:$0xff]  }
 0x2ea   : > { %3178 = vmatprep.subr.bf16.mxu1 %v6513_v51  ;;  %v6555_v51 = vld [vmem:[%s9005_s5 + $0x4d4] ss:$36 sps:$4 sm:$0xff]  }
 0x2ed   : > { %3179 = vmatpush2.bf16.msra.mxu1 %v6511_v52 }
 0x2ee   : > { %3277 = vmatprep.subr.bf16.mxu1 %v6519_v55  ;;  %v6553_v55 = vld [vmem:[%s9005_s5 + $0x4d0] ss:$36 sps:$4 sm:$0xff]  }
 0x350   : > { %v1655_v2 = vpop.f32.mrf.mxu1 }
 0x352   : > { %v1657_v5 = vpop.f32.mrf.mxu1 }
 0x353   : > { %v1612_v7 = vpop.f32.mrf.mxu0 }
 0x354   : > { %v1613_v10 = vadd.f32 %v1612_v7, %v1182_v6  ;;  %v1659_v11 = vpop.f32.mrf.mxu1  ;;  %v6568_v7 = vld [vmem:[%s9005_s5 + $0x1b8] ss:$36 sps:$4 sm:$0xff]  }
 0x355   : > { %v1614_v8 = vpop.f32.mrf.mxu0 }
 0x356   : > { %v1615_v9 = vadd.f32 %v1614_v8, %v1186_v4  ;;  %v1656_v22 = vadd.f32 %v1655_v2, %v1613_v10  ;;  %v1661_v23 = vpop.f32.mrf.mxu1  ;;  %v6562_v2 = vld [vmem:[%s9005_s5 + $0x200] ss:$36 sps:$4 sm:$0xff]   ;;  %v6576_v8 = vld [vmem:[%s9005_s5 + $0x174] ss:$36 sps:$4 sm:$0xff]  }
 0x357   : > { %v1616_v12 = vpop.f32.mrf.mxu0  ;;  %v6579_v10 = vld [vmem:[%s9005_s5 + $0x17c] ss:$36 sps:$4 sm:$0xff]  }
 0x358   : > { %v1617_v16 = vadd.f32 %v1616_v12, %v1182_v6  ;;  %v1658_v18 = vadd.f32 %v1657_v5, %v1615_v9  ;;  %v1746_v29 = vmax.f32 %v1656_v22, 0.0  ;;  %v6565_v5 = vld [vmem:[%s9005_s5 + $0x208] ss:$36 sps:$4 sm:$0xff]   ;;  %v6571_v9 = vld [vmem:[%s9005_s5 + $0x1c0] ss:$36 sps:$4 sm:$0xff]  }
 0x359   : > { %v1618_v17 = vpop.f32.mrf.mxu0  ;;  %v6573_v6 = vld [vmem:[%s9005_s5 + $0x1c4] ss:$36 sps:$4 sm:$0xff]   ;;  %v6582_v12 = vld [vmem:[%s9005_s5 + $0x12c] ss:$36 sps:$4 sm:$0xff]  }
 0x35a   : > { %v1660_v19 = vadd.f32 %v1659_v11, %v1617_v16  ;;  %v1619_v20 = vadd.f32 %v1618_v17, %v1186_v4  ;;  %v1747_v27 = vmax.f32 %v1658_v18, 0.0  ;;  %v6570_v4 = vld [vmem:[%s9005_s5 + $0x1bc] ss:$36 sps:$4 sm:$0xff]   ;;  %v6574_v11 = vld [vmem:[%s9005_s5 + $0x170] ss:$36 sps:$4 sm:$0xff]  }
 0x35b   : > { %v6577_v16 = vld [vmem:[%s9005_s5 + $0x178] ss:$36 sps:$4 sm:$0xff]   ;;  %v6580_v18 = vld [vmem:[%s9005_s5 + $0x128] ss:$36 sps:$4 sm:$0xff]  }
 0x35c   : > { %v1662_v24 = vadd.f32 %v1661_v23, %v1619_v20  ;;  %v1749_v25 = vmax.f32 %v1660_v19, 0.0  ;;  %v6585_v17 = vld [vmem:[%s9005_s5 + $0x134] ss:$36 sps:$4 sm:$0xff]   ;;  %v6588_v19 = vld [vmem:[%s9005_s5 + $0xe4] ss:$36 sps:$4 sm:$0xff]  }
 0x35d   : > { %v6583_v20 = vld [vmem:[%s9005_s5 + $0x130] ss:$36 sps:$4 sm:$0xff]   ;;  %v6586_v23 = vld [vmem:[%s9005_s5 + $0xe0] ss:$36 sps:$4 sm:$0xff]  }
 0x35e   : > { %v1750_v28 = vmax.f32 %v1662_v24, 0.0  ;;  %v7770_v32 = vpack.c.bf16 %v1749_v25, %v1746_v29  ;;  %v6591_v22 = vld [vmem:[%s9005_s5 + $0xec] ss:$36 sps:$4 sm:$0xff]   ;;  %v6594_v24 = vld [vmem:[%s9005_s5 + $0x9c] ss:$36 sps:$4 sm:$0xff]  }
 0x35f   : > { %v6589_v25 = vld [vmem:[%s9005_s5 + $0xe8] ss:$36 sps:$4 sm:$0xff]   ;;  %v6600_v29 = vld [vmem:[%s9005_s5 + $0x54] ss:$36 sps:$4 sm:$0xff]  }
 0x360   : > { %v7765_v30 = vpack.c.bf16 %v1750_v28, %v1747_v27  ;;  %v6597_v27 = vld [vmem:[%s9005_s5 + $0xa4] ss:$36 sps:$4 sm:$0xff]   ;;  %v6592_v28 = vld [vmem:[%s9005_s5 + $0x98] ss:$36 sps:$4 sm:$0xff]  }
 0x362   : > { %3180 = vmatprep.mubr.bf16.mxu1 %v7765_v30 }
 0x363   : > { %3181 = vmatmul.mubr.bf16.vlgmr.msra.gmra.mxu1 %v7770_v32 }
 0x364   : > { %3278 = vmatpush1.bf16.msra.mxu1 %v6517_v31  ;;  %3309 = vmatprep.mubr.bf16.mxu1 %v7060_v26  ;;  %v6595_v31 = vld [vmem:[%s9005_s5 + $0xa0] ss:$36 sps:$4 sm:$0xff]  }
 0x365   : > { %3279 = vmatprep.subr.bf16.mxu1 %v6525_v33  ;;  %v6603_v33 = vld [vmem:[%s9005_s5 + $0x5c] ss:$36 sps:$4 sm:$0xff]  }
 0x368   : > { %3280 = vmatpush1.bf16.msra.mxu1 %v6523_v34  ;;  %v6598_v34 = vld [vmem:[%s9005_s5 + $0x50] ss:$36 sps:$4 sm:$0xff]  }
 0x369   : > { %3281 = vmatprep.subr.bf16.mxu1 %v6531_v35  ;;  %v6606_v35 = vld [vmem:[%s9005_s5 + $0xc] ss:$36 sps:$4 sm:$0xff]  }
 0x36c   : > { %3282 = vmatpush1.bf16.msra.mxu1 %v6529_v36  ;;  %v6601_v36 = vld [vmem:[%s9005_s5 + $0x58] ss:$36 sps:$4 sm:$0xff]  }
 0x36d   : > { %3283 = vmatprep.subr.bf16.mxu1 %v6537_v37  ;;  %v6609_v37 = vld [vmem:[%s9005_s5 + $0x14] ss:$36 sps:$4 sm:$0xff]  }
 0x370   : > { %v6066_v40 = vpop.f32.mrf.mxu1  ;;  %3284 = vmatpush1.bf16.msra.mxu1 %v6535_v38  ;;  %v6604_v38 = vld [vmem:[%s9005_s5 + $0x8] ss:$36 sps:$4 sm:$0xff]  }
 0x371   : > { %3285 = vmatprep.subr.bf16.mxu1 %v6543_v39  ;;  %v6612_v39 = vld [vmem:[%s9005_s5 + $0x444] ss:$36 sps:$4 sm:$0xff]  }
 0x372   : > { %v6067_v44 = vpop.f32.mrf.mxu1 }
 0x373   : > { %v6068_v45 = vadd.f32 %v6067_v44, %v6066_v40  ;;  %v1739_v46 = vpop.f32.mrf.mxu0  ;;  %v6607_v40 = vld [vmem:[%s9005_s5 + $0x10] ss:$36 sps:$4 sm:$0xff]   ;;  %v6613_v44 = vld [vmem:[%s9005_s5 + $0x448] ss:$36 sps:$4 sm:$0xff]  }
 0x374   : > { %v6069_v47 = vpop.f32.mrf.mxu1  ;;  %3286 = vmatpush1.bf16.msra.mxu1 %v6541_v41  ;;  %v6615_v41 = vld [vmem:[%s9005_s5 + $0x44c] ss:$36 sps:$4 sm:$0xff]  }
 0x375   : > { %v1699_v49 = vadd.f32 %v6068_v45, %v1190_v42  ;;  %v6243_v50 = vpop.f32.mrf.mxu0  ;;  %3287 = vmatprep.subr.bf16.mxu1 %v6549_v43  ;;  %v6618_v43 = vld [vmem:[%s9005_s5 + $0x3fc] ss:$36 sps:$4 sm:$0xff]   ;;  %v6621_v45 = vld [vmem:[%s9005_s5 + $0x404] ss:$36 sps:$4 sm:$0xff]  }
 0x376   : > { %v6070_v52 = vpop.f32.mrf.mxu1  ;;  %v6622_v50 = vld [vmem:[%s9005_s5 + $0x3b0] ss:$36 sps:$4 sm:$0xff]  }
 0x377   : > { %v6071_v53 = vadd.f32 %v6070_v52, %v6069_v47  ;;  %v1742_v54 = vpop.f32.mrf.mxu0  ;;  %v1740_v56 = vadd.f32 %v1739_v46, %v1699_v49  ;;  %v6616_v46 = vld [vmem:[%s9005_s5 + $0x3f8] ss:$36 sps:$4 sm:$0xff]  }
 0x378   : > { %3288 = vmatpush1.bf16.msra.mxu1 %v6547_v48  ;;  %v6624_v47 = vld [vmem:[%s9005_s5 + $0x3b4] ss:$36 sps:$4 sm:$0xff]   ;;  %v6619_v48 = vld [vmem:[%s9005_s5 + $0x400] ss:$36 sps:$4 sm:$0xff]  }
 0x379   : > { %v1702_v57 = vadd.f32 %v6071_v53, %v1190_v42  ;;  %v6244_v58 = vpop.f32.mrf.mxu0  ;;  %3289 = vmatprep.subr.bf16.mxu1 %v6555_v51  ;;  %v1748_v62 = vmax.f32 %v1740_v56, 0.0  ;;  %v6610_v42 = vld [vmem:[%s9005_s5 + $0x440] ss:$36 sps:$4 sm:$0xff]   ;;  %v6630_v51 = vld [vmem:[%s9005_s5 + $0x36c] ss:$36 sps:$4 sm:$0xff]  }
 0x37a   : > { %v6627_v49 = vld [vmem:[%s9005_s5 + $0x3bc] ss:$36 sps:$4 sm:$0xff]   ;;  %v6633_v53 = vld [vmem:[%s9005_s5 + $0x374] ss:$36 sps:$4 sm:$0xff]  }
 0x37b   : > { %v1743_v60 = vadd.f32 %v1742_v54, %v1702_v57  ;;  %v6625_v52 = vld [vmem:[%s9005_s5 + $0x3b8] ss:$36 sps:$4 sm:$0xff]   ;;  %v6628_v54 = vld [vmem:[%s9005_s5 + $0x368] ss:$36 sps:$4 sm:$0xff]   ;;  %v6631_v56 = vld [vmem:[%s9005_s5 + $0x370] ss:$36 sps:$4 sm:$0xff]  }
 0x37c   : > { %3290 = vmatpush1.bf16.msra.mxu1 %v6553_v55  ;;  %v6636_v55 = vld [vmem:[%s9005_s5 + $0x324] ss:$36 sps:$4 sm:$0xff]   ;;  %v6639_v57 = vld [vmem:[%s9005_s5 + $0x32c] ss:$36 sps:$4 sm:$0xff]  }
 0x37d   : > { %v1751_v63 = vmax.f32 %v1743_v60, 0.0  ;;  %3291 = vmatprep.subr.bf16.mxu1 %v6561_v59  ;;  %v6634_v58 = vld [vmem:[%s9005_s5 + $0x320] ss:$36 sps:$4 sm:$0xff]   ;;  %v6637_v60 = vld [vmem:[%s9005_s5 + $0x328] ss:$36 sps:$4 sm:$0xff]  }
 0x37e   : > { %v6642_v59 = vld [vmem:[%s9005_s5 + $0x2dc] ss:$36 sps:$4 sm:$0xff]  }
 0x37f   : > { %v7824_v3 = vpack.c.bf16 %v1751_v63, %v1748_v62  ;;  %v6640_v62 = vld [vmem:[%s9005_s5 + $0x2d8] ss:$36 sps:$4 sm:$0xff]  }
 0x380   : > { %3292 = vmatpush1.bf16.msra.mxu1 %v6559_v61  ;;  %v6645_v61 = vld [vmem:[%s9005_s5 + $0x2e4] ss:$36 sps:$4 sm:$0xff]   ;;  %v6648_v63 = vld [vmem:[%s9005_s5 + $0x294] ss:$36 sps:$4 sm:$0xff]  }
 0x381   : > { %3224 = vmatmul.mubr.bf16.vlgmr.msra.gmra.mxu0 %v7824_v3  ;;  %3320 = vmatprep.subr.bf16.mxu1 %v6567_v0  ;;  %v6643_v0 = vld [vmem:[%s9005_s5 + $0x2e0] ss:$36 sps:$4 sm:$0xff]  }
 0x382   : > { %3235 = vmatpush1.bf16.msra.mxu0 %v6562_v2  ;;  %3266 = vmatprep.mubr.bf16.mxu0 %v7765_v30  ;;  %v6651_v2 = vld [vmem:[%s9005_s5 + $0x29c] ss:$36 sps:$4 sm:$0xff]  }
 0x383   : > { %3310 = vmatmul.mubr.bf16.vlgmr.msra.gmra.mxu1 %v7824_v3  ;;  %3236 = vmatprep.subr.bf16.mxu0 %v6570_v4  ;;  %v6646_v4 = vld [vmem:[%s9005_s5 + $0x290] ss:$36 sps:$4 sm:$0xff]  }
 0x384   : > { %3321 = vmatpush1.bf16.msra.mxu1 %v6565_v5  ;;  %3352 = vmatprep.mubr.bf16.mxu1 %v7765_v30  ;;  %v6654_v5 = vld [vmem:[%s9005_s5 + $0x24c] ss:$36 sps:$4 sm:$0xff]  }
 0x385   : > { %3322 = vmatprep.subr.bf16.mxu1 %v6573_v6  ;;  %v6649_v6 = vld [vmem:[%s9005_s5 + $0x298] ss:$36 sps:$4 sm:$0xff]  }
 0x386   : > { %3237 = vmatpush1.bf16.msra.mxu0 %v6568_v7  ;;  %v6657_v7 = vld [vmem:[%s9005_s5 + $0x254] ss:$36 sps:$4 sm:$0xff]  }
 0x387   : > { %3238 = vmatprep.subr.bf16.mxu0 %v6576_v8  ;;  %v6652_v8 = vld [vmem:[%s9005_s5 + $0x248] ss:$36 sps:$4 sm:$0xff]  }
 0x388   : > { %3323 = vmatpush1.bf16.msra.mxu1 %v6571_v9  ;;  %v6660_v9 = vld [vmem:[%s9005_s5 + $0x68c] ss:$36 sps:$4 sm:$0xff]  }
 0x389   : > { %3324 = vmatprep.subr.bf16.mxu1 %v6579_v10  ;;  %v6655_v10 = vld [vmem:[%s9005_s5 + $0x250] ss:$36 sps:$4 sm:$0xff]  }
 0x38a   : > { %3239 = vmatpush1.bf16.msra.mxu0 %v6574_v11  ;;  %v6663_v11 = vld [vmem:[%s9005_s5 + $0x694] ss:$36 sps:$4 sm:$0xff]  }
 0x38b   : > { %3240 = vmatprep.subr.bf16.mxu0 %v6582_v12  ;;  %v6658_v12 = vld [vmem:[%s9005_s5 + $0x688] ss:$36 sps:$4 sm:$0xff]  }
 0x38c   : > { %3325 = vmatpush1.bf16.msra.mxu1 %v6577_v16  ;;  %v6666_v16 = vld [vmem:[%s9005_s5 + $0x644] ss:$36 sps:$4 sm:$0xff]  }
 0x38d   : > { %3326 = vmatprep.subr.bf16.mxu1 %v6585_v17  ;;  %v6661_v17 = vld [vmem:[%s9005_s5 + $0x690] ss:$36 sps:$4 sm:$0xff]  }
 0x38e   : > { %3241 = vmatpush1.bf16.msra.mxu0 %v6580_v18  ;;  %v6669_v18 = vld [vmem:[%s9005_s5 + $0x64c] ss:$36 sps:$4 sm:$0xff]  }
 0x38f   : > { %3242 = vmatprep.subr.bf16.mxu0 %v6588_v19  ;;  %v6664_v19 = vld [vmem:[%s9005_s5 + $0x640] ss:$36 sps:$4 sm:$0xff]  }
 0x390   : > { %3327 = vmatpush1.bf16.msra.mxu1 %v6583_v20  ;;  %v6672_v20 = vld [vmem:[%s9005_s5 + $0x5fc] ss:$36 sps:$4 sm:$0xff]  }
 0x391   : > { %3328 = vmatprep.subr.bf16.mxu1 %v6591_v22  ;;  %v6667_v22 = vld [vmem:[%s9005_s5 + $0x648] ss:$36 sps:$4 sm:$0xff]  }
 0x392   : > { %3243 = vmatpush1.bf16.msra.mxu0 %v6586_v23  ;;  %v6675_v23 = vld [vmem:[%s9005_s5 + $0x604] ss:$36 sps:$4 sm:$0xff]  }
 0x393   : > { %3244 = vmatprep.subr.bf16.mxu0 %v6594_v24  ;;  %v6670_v24 = vld [vmem:[%s9005_s5 + $0x5f8] ss:$36 sps:$4 sm:$0xff]  }
 0x394   : > { %3329 = vmatpush1.bf16.msra.mxu1 %v6589_v25  ;;  %v6678_v25 = vld [vmem:[%s9005_s5 + $0x5b4] ss:$36 sps:$4 sm:$0xff]  }
 0x395   : > { %3330 = vmatprep.subr.bf16.mxu1 %v6597_v27  ;;  %v6673_v27 = vld [vmem:[%s9005_s5 + $0x600] ss:$36 sps:$4 sm:$0xff]  }
 0x396   : > { %3245 = vmatpush1.bf16.msra.mxu0 %v6592_v28  ;;  %v6681_v28 = vld [vmem:[%s9005_s5 + $0x5bc] ss:$36 sps:$4 sm:$0xff]  }
 0x397   : > { %3246 = vmatprep.subr.bf16.mxu0 %v6600_v29  ;;  %v6676_v29 = vld [vmem:[%s9005_s5 + $0x5b0] ss:$36 sps:$4 sm:$0xff]  }
 0x398   : > { %3331 = vmatpush1.bf16.msra.mxu1 %v6595_v31  ;;  %v6684_v31 = vld [vmem:[%s9005_s5 + $0x56c] ss:$36 sps:$4 sm:$0xff]  }
 0x399   : > { %3332 = vmatprep.subr.bf16.mxu1 %v6603_v33  ;;  %v6679_v33 = vld [vmem:[%s9005_s5 + $0x5b8] ss:$36 sps:$4 sm:$0xff]  }
 0x39a   : > { %3247 = vmatpush1.bf16.msra.mxu0 %v6598_v34  ;;  %v6687_v34 = vld [vmem:[%s9005_s5 + $0x574] ss:$36 sps:$4 sm:$0xff]  }
 0x39b   : > { %3248 = vmatprep.subr.bf16.mxu0 %v6606_v35  ;;  %v6682_v35 = vld [vmem:[%s9005_s5 + $0x568] ss:$36 sps:$4 sm:$0xff]  }
 0x39c   : > { %3333 = vmatpush1.bf16.msra.mxu1 %v6601_v36  ;;  %v6690_v36 = vld [vmem:[%s9005_s5 + $0x524] ss:$36 sps:$4 sm:$0xff]  }
 0x39d   : > { %3334 = vmatprep.subr.bf16.mxu1 %v6609_v37  ;;  %v6685_v37 = vld [vmem:[%s9005_s5 + $0x570] ss:$36 sps:$4 sm:$0xff]  }
 0x39e   : > { %3249 = vmatpush1.bf16.msra.mxu0 %v6604_v38  ;;  %v6693_v38 = vld [vmem:[%s9005_s5 + $0x52c] ss:$36 sps:$4 sm:$0xff]  }
 0x39f   : > { %3250 = vmatprep.subr.bf16.mxu0 %v6612_v39  ;;  %v6688_v39 = vld [vmem:[%s9005_s5 + $0x520] ss:$36 sps:$4 sm:$0xff]  }
 0x3a0   : > { %3335 = vmatpush1.bf16.msra.mxu1 %v6607_v40  ;;  %v6696_v40 = vld [vmem:[%s9005_s5 + $0x4dc] ss:$36 sps:$4 sm:$0xff]  }
 0x3a1   : > { %3336 = vmatprep.subr.bf16.mxu1 %v6615_v41  ;;  %v6691_v41 = vld [vmem:[%s9005_s5 + $0x528] ss:$36 sps:$4 sm:$0xff]  }
 0x3a2   : > { %3251 = vmatpush2.bf16.msra.mxu0 %v6610_v42  ;;  %v6699_v42 = vld [vmem:[%s9005_s5 + $0x4e4] ss:$36 sps:$4 sm:$0xff]  }
 0x3a3   : > { %3252 = vmatprep.subr.bf16.mxu0 %v6618_v43  ;;  %v6694_v43 = vld [vmem:[%s9005_s5 + $0x4d8] ss:$36 sps:$4 sm:$0xff]  }
 0x3a4   : > { %3337 = vmatpush2.bf16.msra.mxu1 %v6613_v44  ;;  %v6702_v44 = vld [vmem:[%s9005_s5 + $0x494] ss:$36 sps:$4 sm:$0xff]  }
 0x3a5   : > { %3338 = vmatprep.subr.bf16.mxu1 %v6621_v45  ;;  %v6697_v45 = vld [vmem:[%s9005_s5 + $0x4e0] ss:$36 sps:$4 sm:$0xff]  }
 0x3a6   : > { %3253 = vmatpush2.bf16.msra.mxu0 %v6616_v46  ;;  %v6705_v46 = vld [vmem:[%s9005_s5 + $0x49c] ss:$36 sps:$4 sm:$0xff]  }
 0x3a7   : > { %3254 = vmatprep.subr.bf16.mxu0 %v6624_v47  ;;  %v6700_v47 = vld [vmem:[%s9005_s5 + $0x490] ss:$36 sps:$4 sm:$0xff]  }
 0x3a8   : > { %3339 = vmatpush2.bf16.msra.mxu1 %v6619_v48  ;;  %v6708_v48 = vld [vmem:[%s9005_s5 + $0x214] ss:$36 sps:$4 sm:$0xff]  }
 0x3a9   : > { %3340 = vmatprep.subr.bf16.mxu1 %v6627_v49  ;;  %v6703_v49 = vld [vmem:[%s9005_s5 + $0x498] ss:$36 sps:$4 sm:$0xff]  }
 0x3aa   : > { %3255 = vmatpush2.bf16.msra.mxu0 %v6622_v50  ;;  %v6709_v50 = vld [vmem:[%s9005_s5 + $0x458] ss:$36 sps:$4 sm:$0xff]  }
 0x3ab   : > { %3256 = vmatprep.subr.bf16.mxu0 %v6630_v51  ;;  %v6706_v51 = vld [vmem:[%s9005_s5 + $0x210] ss:$36 sps:$4 sm:$0xff]  }
 0x3ac   : > { %3341 = vmatpush2.bf16.msra.mxu1 %v6625_v52  ;;  %v6712_v52 = vld [vmem:[%s9005_s5 + $0x1cc] ss:$36 sps:$4 sm:$0xff]  }
 0x3ad   : > { %3342 = vmatprep.subr.bf16.mxu1 %v6633_v53  ;;  %v6713_v53 = vld [vmem:[%s9005_s5 + $0x218] ss:$36 sps:$4 sm:$0xff]  }
 0x3ae   : > { %3257 = vmatpush2.bf16.msra.mxu0 %v6628_v54  ;;  %v6714_v54 = vld [vmem:[%s9005_s5 + $0x410] ss:$36 sps:$4 sm:$0xff]  }
 0x3af   : > { %3258 = vmatprep.subr.bf16.mxu0 %v6636_v55  ;;  %v6710_v55 = vld [vmem:[%s9005_s5 + $0x1c8] ss:$36 sps:$4 sm:$0xff]  }
 0x3b0   : > { %3343 = vmatpush2.bf16.msra.mxu1 %v6631_v56  ;;  %v6717_v56 = vld [vmem:[%s9005_s5 + $0x184] ss:$36 sps:$4 sm:$0xff]  }
 0x3b1   : > { %3344 = vmatprep.subr.bf16.mxu1 %v6639_v57  ;;  %v6718_v57 = vld [vmem:[%s9005_s5 + $0x1d0] ss:$36 sps:$4 sm:$0xff]  }
 0x3b2   : > { %3259 = vmatpush2.bf16.msra.mxu0 %v6634_v58  ;;  %v6719_v58 = vld [vmem:[%s9005_s5 + $0x3c8] ss:$36 sps:$4 sm:$0xff]  }
 0x3b3   : > { %3260 = vmatprep.subr.bf16.mxu0 %v6642_v59  ;;  %v6715_v59 = vld [vmem:[%s9005_s5 + $0x180] ss:$36 sps:$4 sm:$0xff]  }
 0x3b4   : > { %3345 = vmatpush2.bf16.msra.mxu1 %v6637_v60  ;;  %v6722_v60 = vld [vmem:[%s9005_s5 + $0x13c] ss:$36 sps:$4 sm:$0xff]  }
 0x3b5   : > { %3346 = vmatprep.subr.bf16.mxu1 %v6645_v61  ;;  %v6724_v61 = vld [vmem:[%s9005_s5 + $0x380] ss:$36 sps:$4 sm:$0xff]  }
 0x3b6   : > { %3261 = vmatpush2.bf16.msra.mxu0 %v6640_v62  ;;  %v6720_v62 = vld [vmem:[%s9005_s5 + $0x138] ss:$36 sps:$4 sm:$0xff]  }
 0x3b7   : > { %3262 = vmatprep.subr.bf16.mxu0 %v6648_v63  ;;  %v6727_v63 = vld [vmem:[%s9005_s5 + $0xf4] ss:$36 sps:$4 sm:$0xff]  }
 0x3b8   : > { %3347 = vmatpush2.bf16.msra.mxu1 %v6643_v0  ;;  %v6728_v0 = vld [vmem:[%s9005_s5 + $0x140] ss:$36 sps:$4 sm:$0xff]  }
 0x3b9   : > { %3348 = vmatprep.subr.bf16.mxu1 %v6651_v2  ;;  %v6729_v2 = vld [vmem:[%s9005_s5 + $0x338] ss:$36 sps:$4 sm:$0xff]  }
 0x3ba   : > { %3263 = vmatpush2.bf16.msra.mxu0 %v6646_v4  ;;  %v6725_v4 = vld [vmem:[%s9005_s5 + $0xf0] ss:$36 sps:$4 sm:$0xff]  }
 0x3bb   : > { %3264 = vmatprep.subr.bf16.mxu0 %v6654_v5  ;;  %v6732_v5 = vld [vmem:[%s9005_s5 + $0xac] ss:$36 sps:$4 sm:$0xff]  }
 0x3bc   : > { %3349 = vmatpush2.bf16.msra.mxu1 %v6649_v6  ;;  %v6733_v6 = vld [vmem:[%s9005_s5 + $0xf8] ss:$36 sps:$4 sm:$0xff]  }
 0x3bd   : > { %3350 = vmatprep.subr.bf16.mxu1 %v6657_v7  ;;  %v6734_v7 = vld [vmem:[%s9005_s5 + $0x2f0] ss:$36 sps:$4 sm:$0xff]  }
 0x3be   : > { %3265 = vmatpush2.bf16.msra.mxu0 %v6652_v8  ;;  %v6730_v8 = vld [vmem:[%s9005_s5 + $0xa8] ss:$36 sps:$4 sm:$0xff]  }
 0x3bf   : > { %3363 = vmatprep.subr.bf16.mxu0 %v6660_v9  ;;  %v6737_v9 = vld [vmem:[%s9005_s5 + $0x64] ss:$36 sps:$4 sm:$0xff]  }
 0x3c0   : > { %3351 = vmatpush2.bf16.msra.mxu1 %v6655_v10  ;;  %v6738_v10 = vld [vmem:[%s9005_s5 + $0xb0] ss:$36 sps:$4 sm:$0xff]  }
 0x3c1   : > { %3267 = vmatmul.mubr.bf16.vlgmr.msra.gmra.mxu0 %v7770_v32  ;;  %3449 = vmatprep.subr.bf16.mxu1 %v6663_v11  ;;  %v6739_v11 = vld [vmem:[%s9005_s5 + $0x2a8] ss:$36 sps:$4 sm:$0xff]  }
 0x3c2   : > { %3364 = vmatpush1.bf16.msra.mxu0 %v6658_v12  ;;  %3395 = vmatprep.mubr.bf16.mxu0 %v7060_v26  ;;  %v6735_v12 = vld [vmem:[%s9005_s5 + $0x60] ss:$36 sps:$4 sm:$0xff]  }
 0x3c3   : > { %3353 = vmatmul.mubr.bf16.vlgmr.msra.gmra.mxu1 %v7770_v32  ;;  %3365 = vmatprep.subr.bf16.mxu0 %v6666_v16  ;;  %v6742_v16 = vld [vmem:[%s9005_s5 + $0x1c] ss:$36 sps:$4 sm:$0xff]  }
 0x3c4   : > { %3450 = vmatpush1.bf16.msra.mxu1 %v6661_v17  ;;  %3481 = vmatprep.mubr.bf16.mxu1 %v7060_v26  ;;  %v6743_v17 = vld [vmem:[%s9005_s5 + $0x68] ss:$36 sps:$4 sm:$0xff]  }
 0x3c5   : > { %3451 = vmatprep.subr.bf16.mxu1 %v6669_v18  ;;  %v6744_v18 = vld [vmem:[%s9005_s5 + $0x260] ss:$36 sps:$4 sm:$0xff]  }
 0x3c6   : > { %3366 = vmatpush1.bf16.msra.mxu0 %v6664_v19  ;;  %v6740_v19 = vld [vmem:[%s9005_s5 + $0x18] ss:$36 sps:$4 sm:$0xff]  }
 0x3c7   : > { %3367 = vmatprep.subr.bf16.mxu0 %v6672_v20  ;;  %v6747_v20 = vld [vmem:[%s9005_s5 + $0x454] ss:$36 sps:$4 sm:$0xff]  }
 0x3c8   : > { %3452 = vmatpush1.bf16.msra.mxu1 %v6667_v22  ;;  %v6748_v22 = vld [vmem:[%s9005_s5 + $0x20] ss:$36 sps:$4 sm:$0xff]  }
 0x3c9   : > { %3453 = vmatprep.subr.bf16.mxu1 %v6675_v23  ;;  %v6760_v23 = vld [vmem:[%s9006_s6 + $0xac] ss:$12 sps:$4 sm:$0xff]  }
 0x3ca   : > { %3368 = vmatpush1.bf16.msra.mxu0 %v6670_v24  ;;  %v6745_v24 = vld [vmem:[%s9005_s5 + $0x450] ss:$36 sps:$4 sm:$0xff]  }
 0x3cb   : > { %3369 = vmatprep.subr.bf16.mxu0 %v6678_v25  ;;  %v6751_v25 = vld [vmem:[%s9005_s5 + $0x40c] ss:$36 sps:$4 sm:$0xff]  }
 0x3cc   : > { %3454 = vmatpush1.bf16.msra.mxu1 %v6673_v27  ;;  %v6758_v27 = vld [vmem:[%s9006_s6 + $0xa8] ss:$12 sps:$4 sm:$0xff]  }
 0x3cd   : > { %3455 = vmatprep.subr.bf16.mxu1 %v6681_v28  ;;  %v6766_v28 = vld [vmem:[%s9006_s6 + $0x94] ss:$12 sps:$4 sm:$0xff]  }
 0x3ce   : > { %3370 = vmatpush1.bf16.msra.mxu0 %v6676_v29  ;;  %v6749_v29 = vld [vmem:[%s9005_s5 + $0x408] ss:$36 sps:$4 sm:$0xff]  }
 0x3cf   : > { %3371 = vmatprep.subr.bf16.mxu0 %v6684_v31  ;;  %v6754_v31 = vld [vmem:[%s9005_s5 + $0x3c4] ss:$36 sps:$4 sm:$0xff]  }
 0x3d0   : > { %3456 = vmatpush1.bf16.msra.mxu1 %v6679_v33  ;;  %v6764_v33 = vld [vmem:[%s9006_s6 + $0x90] ss:$12 sps:$4 sm:$0xff]  }
 0x3d1   : > { %3457 = vmatprep.subr.bf16.mxu1 %v6687_v34  ;;  %v6772_v34 = vld [vmem:[%s9006_s6 + $0x7c] ss:$12 sps:$4 sm:$0xff]  }
 0x3d2   : > { %3372 = vmatpush1.bf16.msra.mxu0 %v6682_v35  ;;  %v6752_v35 = vld [vmem:[%s9005_s5 + $0x3c0] ss:$36 sps:$4 sm:$0xff]  }
 0x3d3   : > { %3373 = vmatprep.subr.bf16.mxu0 %v6690_v36  ;;  %v6757_v36 = vld [vmem:[%s9005_s5 + $0x37c] ss:$36 sps:$4 sm:$0xff]  }
 0x3d4   : > { %3458 = vmatpush1.bf16.msra.mxu1 %v6685_v37  ;;  %v6770_v37 = vld [vmem:[%s9006_s6 + $0x78] ss:$12 sps:$4 sm:$0xff]  }
 0x3d5   : > { %3459 = vmatprep.subr.bf16.mxu1 %v6693_v38  ;;  %v6778_v38 = vld [vmem:[%s9006_s6 + $0x64] ss:$12 sps:$4 sm:$0xff]  }
 0x3d6   : > { %3374 = vmatpush1.bf16.msra.mxu0 %v6688_v39  ;;  %v6755_v39 = vld [vmem:[%s9005_s5 + $0x378] ss:$36 sps:$4 sm:$0xff]  }
 0x3d7   : > { %3375 = vmatprep.subr.bf16.mxu0 %v6696_v40  ;;  %v6763_v40 = vld [vmem:[%s9005_s5 + $0x334] ss:$36 sps:$4 sm:$0xff]  }
 0x3d8   : > { %3460 = vmatpush1.bf16.msra.mxu1 %v6691_v41  ;;  %v6776_v41 = vld [vmem:[%s9006_s6 + $0x60] ss:$12 sps:$4 sm:$0xff]  }
 0x3d9   : > { %3461 = vmatprep.subr.bf16.mxu1 %v6699_v42  ;;  %v6784_v42 = vld [vmem:[%s9006_s6 + $0x4c] ss:$12 sps:$4 sm:$0xff]  }
 0x3da   : > { %3376 = vmatpush1.bf16.msra.mxu0 %v6694_v43  ;;  %v6761_v43 = vld [vmem:[%s9005_s5 + $0x330] ss:$36 sps:$4 sm:$0xff]  }
 0x3db   : > { %3377 = vmatprep.subr.bf16.mxu0 %v6702_v44  ;;  %v6769_v44 = vld [vmem:[%s9005_s5 + $0x2ec] ss:$36 sps:$4 sm:$0xff]  }
 0x3dc   : > { %3462 = vmatpush1.bf16.msra.mxu1 %v6697_v45  ;;  %v6782_v45 = vld [vmem:[%s9006_s6 + $0x48] ss:$12 sps:$4 sm:$0xff]  }
 0x3dd   : > { %3463 = vmatprep.subr.bf16.mxu1 %v6705_v46  ;;  %v6788_v46 = vld [vmem:[%s9006_s6 + $0x34] ss:$12 sps:$4 sm:$0xff]  }
 0x3de   : > { %3378 = vmatpush1.bf16.msra.mxu0 %v6700_v47  ;;  %v6767_v47 = vld [vmem:[%s9005_s5 + $0x2e8] ss:$36 sps:$4 sm:$0xff]  }
 0x3df   : > { %3406 = vmatprep.subr.bf16.mxu0 %v6708_v48  ;;  %v6775_v48 = vld [vmem:[%s9005_s5 + $0x2a4] ss:$36 sps:$4 sm:$0xff]  }
 0x3e0   : > { %3464 = vmatpush1.bf16.msra.mxu1 %v6703_v49  ;;  %v6786_v49 = vld [vmem:[%s9006_s6 + $0x30] ss:$12 sps:$4 sm:$0xff]  }
 0x3e1   : > { %3396 = vmatmul.mubr.bf16.vlgmr.msra.gmra.mxu0 %v7824_v3  ;;  %6081 = vmatprep.subr.bf16.mxu1 %v6709_v50  ;;  %v6792_v50 = vld [vmem:[%s9006_s6 + $0x1c] ss:$12 sps:$4 sm:$0xff]  }
 0x3e2   : > { %3407 = vmatpush1.bf16.msra.mxu0 %v6706_v51  ;;  %3438 = vmatprep.mubr.bf16.mxu0 %v7765_v30  ;;  %v6773_v51 = vld [vmem:[%s9005_s5 + $0x2a0] ss:$36 sps:$4 sm:$0xff]  }
 0x3e3   : > { %3482 = vmatmul.mubr.bf16.vlgmr.msra.gmra.mxu1 %v7824_v3  ;;  %3408 = vmatprep.subr.bf16.mxu0 %v6712_v52  ;;  %v6781_v52 = vld [vmem:[%s9005_s5 + $0x25c] ss:$36 sps:$4 sm:$0xff]  }
 0x3e4   : > { %6082 = vmatpush3.bf16.msra.mxu1 %v6713_v53  ;;  %3524 = vmatprep.mubr.bf16.mxu1 %v7765_v30  ;;  %v6723_v30 = vld [vmem:[%s9005_s5 + $0x188] ss:$36 sps:$4 sm:$0xff]   ;;  %v6790_v53 = vld [vmem:[%s9006_s6 + $0x18] ss:$12 sps:$4 sm:$0xff]  }
 0x3e5   : > { %6083 = vmatprep.subr.bf16.mxu1 %v6714_v54  ;;  %v6796_v54 = vld [vmem:[%s9006_s6 + $0x4] ss:$12 sps:$4 sm:$0xff]  }
 0x3e6   : > { %3409 = vmatpush1.bf16.msra.mxu0 %v6710_v55  ;;  %v6779_v55 = vld [vmem:[%s9005_s5 + $0x258] ss:$36 sps:$4 sm:$0xff]  }
 0x3e7   : > { %3410 = vmatprep.subr.bf16.mxu0 %v6717_v56  ;;  %v6794_v56 = vld [vmem:[%s9006_s6] ss:$12 sps:$4 sm:$0xff]  }
 0x3e8   : > { %6084 = vmatpush3.bf16.msra.mxu1 %v6718_v57  ;;  %v6800_v57 = vld [vmem:[%s9006_s6 + $0x16c] ss:$12 sps:$4 sm:$0xff]  }
 0x3e9   : > { %6085 = vmatprep.subr.bf16.mxu1 %v6719_v58  ;;  %v6785_v58 = vld [vmem:[%s9005_s5 + $0x698] ss:$36 sps:$4 sm:$0xff]  }
 0x3ea   : > { %3411 = vmatpush1.bf16.msra.mxu0 %v6715_v59  ;;  %v6798_v59 = vld [vmem:[%s9006_s6 + $0x168] ss:$12 sps:$4 sm:$0xff]  }
 0x3eb   : > { %3412 = vmatprep.subr.bf16.mxu0 %v6722_v60  ;;  %v6804_v60 = vld [vmem:[%s9006_s6 + $0x154] ss:$12 sps:$4 sm:$0xff]  }
 0x3ec   : > { %6086 = vmatpush3.bf16.msra.mxu1 %v6723_v30  ;;  %v6789_v30 = vld [vmem:[%s9005_s5 + $0x650] ss:$36 sps:$4 sm:$0xff]  }
 0x3ed   : > { %6087 = vmatprep.subr.bf16.mxu1 %v6724_v61  ;;  %v6808_v61 = vld [vmem:[%s9006_s6 + $0x13c] ss:$12 sps:$4 sm:$0xff]  }
 0x3ee   : > { %3413 = vmatpush1.bf16.msra.mxu0 %v6720_v62  ;;  %v6793_v62 = vld [vmem:[%s9005_s5 + $0x608] ss:$36 sps:$4 sm:$0xff]  }
 0x3ef   : > { %3414 = vmatprep.subr.bf16.mxu0 %v6727_v63  ;;  %v6806_v63 = vld [vmem:[%s9006_s6 + $0x138] ss:$12 sps:$4 sm:$0xff]  }
 0x3f0   : > { %6088 = vmatpush3.bf16.msra.mxu1 %v6728_v0  ;;  %v6812_v0 = vld [vmem:[%s9006_s6 + $0x124] ss:$12 sps:$4 sm:$0xff]  }
 0x3f1   : > { %6089 = vmatprep.subr.bf16.mxu1 %v6729_v2  ;;  %v6797_v2 = vld [vmem:[%s9005_s5 + $0x5c0] ss:$36 sps:$4 sm:$0xff]  }
 0x3f2   : > { %3415 = vmatpush1.bf16.msra.mxu0 %v6725_v4  ;;  %v6810_v4 = vld [vmem:[%s9006_s6 + $0x120] ss:$12 sps:$4 sm:$0xff]  }
 0x3f3   : > { %3416 = vmatprep.subr.bf16.mxu0 %v6732_v5  ;;  %v6816_v5 = vld [vmem:[%s9006_s6 + $0x10c] ss:$12 sps:$4 sm:$0xff]  }
 0x3f4   : > { %6090 = vmatpush3.bf16.msra.mxu1 %v6733_v6  ;;  %v6801_v6 = vld [vmem:[%s9005_s5 + $0x578] ss:$36 sps:$4 sm:$0xff]  }
 0x3f5   : > { %6091 = vmatprep.subr.bf16.mxu1 %v6734_v7  ;;  %v6814_v7 = vld [vmem:[%s9006_s6 + $0x108] ss:$12 sps:$4 sm:$0xff]  }
 0x3f6   : > { %3417 = vmatpush1.bf16.msra.mxu0 %v6730_v8  ;;  %v6819_v8 = vld [vmem:[%s9006_s6 + $0xf4] ss:$12 sps:$4 sm:$0xff]  }
 0x3f7   : > { %3418 = vmatprep.subr.bf16.mxu0 %v6737_v9  ;;  %v6805_v9 = vld [vmem:[%s9005_s5 + $0x530] ss:$36 sps:$4 sm:$0xff]  }
 0x3f8   : > { %6092 = vmatpush3.bf16.msra.mxu1 %v6738_v10  ;;  %v6817_v10 = vld [vmem:[%s9006_s6 + $0xf0] ss:$12 sps:$4 sm:$0xff]  }
 0x3f9   : > { %6093 = vmatprep.subr.bf16.mxu1 %v6739_v11  ;;  %v6822_v11 = vld [vmem:[%s9006_s6 + $0xdc] ss:$12 sps:$4 sm:$0xff]  }
 0x3fa   : > { %3419 = vmatpush1.bf16.msra.mxu0 %v6735_v12  ;;  %v6809_v12 = vld [vmem:[%s9005_s5 + $0x4e8] ss:$36 sps:$4 sm:$0xff]  }
 0x3fb   : > { %3420 = vmatprep.subr.bf16.mxu0 %v6742_v16 }
 0x3fc   : > { %6094 = vmatpush3.bf16.msra.mxu1 %v6743_v17  ;;  %v6820_v17 = vld [vmem:[%s9006_s6 + $0xd8] ss:$12 sps:$4 sm:$0xff]  }
 0x3fd   : > { %6095 = vmatprep.subr.bf16.mxu1 %v6744_v18  ;;  %v6825_v18 = vld [vmem:[%s9006_s6 + $0xc4] ss:$12 sps:$4 sm:$0xff]  }
 0x3fe   : > { %3421 = vmatpush1.bf16.msra.mxu0 %v6740_v19  ;;  %v6813_v19 = vld [vmem:[%s9005_s5 + $0x4a0] ss:$36 sps:$4 sm:$0xff]  }
 0x3ff   : > { %3422 = vmatprep.subr.bf16.mxu0 %v6747_v20 }
 0x400   : > { %6096 = vmatpush3.bf16.msra.mxu1 %v6748_v22  ;;  %v6828_v22 = vld [vmem:[%s9006_s6 + $0x22c] ss:$12 sps:$4 sm:$0xff]  }
 0x401   : > { %4981 = vmatprep.subr.bf16.mxu1 %v6760_v23  ;;  %v6823_v23 = vld [vmem:[%s9006_s6 + $0xc0] ss:$12 sps:$4 sm:$0xff]  }
 0x402   : > { %3423 = vmatpush2.bf16.msra.mxu0 %v6745_v24  ;;  %v6852_v24 = vld [vmem:[%s9006_s6 + $0x3ac] ss:$12 sps:$4 sm:$0xff]  }
 0x403   : > { %3525 = vmatmul.mubr.bf16.vlgmr.msra.gmra.mxu1 %v7770_v32  ;;  %3424 = vmatprep.subr.bf16.mxu0 %v6751_v25  ;;  %v8402_v25 = vld [vmem:[%s9011_s11] sm:$0xff] }
 0x404   : > { %4982 = vmatpush1.bf16.msra.mxu1 %v6758_v27  ;;  %v6826_v27 = vld [vmem:[%s9006_s6 + $0x228] ss:$12 sps:$4 sm:$0xff]  }
 0x405   : > { %4983 = vmatprep.subr.bf16.mxu1 %v6766_v28 }
 0x406   : > { %3425 = vmatpush2.bf16.msra.mxu0 %v6749_v29  ;;  %v6831_v29 = vld [vmem:[%s9006_s6 + $0x214] ss:$12 sps:$4 sm:$0xff]  }
 0x407   : > { %3426 = vmatprep.subr.bf16.mxu0 %v6754_v31  ;;  %v2006_v31 = vrot.slane %v8402_v25, %v7363_v14 }
 0x408   : > { %4984 = vmatpush1.bf16.msra.mxu1 %v6764_v33  ;;  %v2002_v33 = vrot.slane %v8402_v25, %v7366_v15 }
 0x409   : > { %4985 = vmatprep.subr.bf16.mxu1 %v6772_v34 }
 0x40a   : > { %3427 = vmatpush2.bf16.msra.mxu0 %v6752_v35  ;;  %v6829_v35 = vld [vmem:[%s9006_s6 + $0x210] ss:$12 sps:$4 sm:$0xff]  }
 0x40b   : > { %3428 = vmatprep.subr.bf16.mxu0 %v6757_v36 }
 0x40c   : > { %4986 = vmatpush1.bf16.msra.mxu1 %v6770_v37 }
 0x40d   : > { %4987 = vmatprep.subr.bf16.mxu1 %v6778_v38  ;;  %v6834_v38 = vld [vmem:[%s9006_s6 + $0x1fc] ss:$12 sps:$4 sm:$0xff]  }
 0x40e   : > { %3429 = vmatpush2.bf16.msra.mxu0 %v6755_v39 }
 0x40f   : > { %3430 = vmatprep.subr.bf16.mxu0 %v6763_v40 }
 0x410   : > { %4988 = vmatpush1.bf16.msra.mxu1 %v6776_v41 }
 0x411   : > { %4989 = vmatprep.subr.bf16.mxu1 %v6784_v42 }
 0x412   : > { %3431 = vmatpush2.bf16.msra.mxu0 %v6761_v43 }
 0x413   : > { %3432 = vmatprep.subr.bf16.mxu0 %v6769_v44 }
 0x414   : > { %4990 = vmatpush1.bf16.msra.mxu1 %v6782_v45  ;;  %v6832_v45 = vld [vmem:[%s9006_s6 + $0x1f8] ss:$12 sps:$4 sm:$0xff]  }
 0x415   : > { %4991 = vmatprep.subr.bf16.mxu1 %v6788_v46 }
 0x416   : > { %3433 = vmatpush2.bf16.msra.mxu0 %v6767_v47 }
 0x417   : > { %3434 = vmatprep.subr.bf16.mxu0 %v6775_v48  ;;  %v6837_v48 = vld [vmem:[%s9006_s6 + $0x1e4] ss:$12 sps:$4 sm:$0xff]  }
 0x418   : > { %4992 = vmatpush1.bf16.msra.mxu1 %v6786_v49 }
 0x419   : > { %4993 = vmatprep.subr.bf16.mxu1 %v6792_v50 }
 0x41a   : > { %3435 = vmatpush2.bf16.msra.mxu0 %v6773_v51 }
 0x41b   : > { %3436 = vmatprep.subr.bf16.mxu0 %v6781_v52 }
 0x41c   : > { %4994 = vmatpush1.bf16.msra.mxu1 %v6790_v53  ;;  %v6835_v53 = vld [vmem:[%s9006_s6 + $0x1e0] ss:$12 sps:$4 sm:$0xff]  }
 0x41d   : > { %4995 = vmatprep.subr.bf16.mxu1 %v6796_v54 }
 0x41e   : > { %3437 = vmatpush2.bf16.msra.mxu0 %v6779_v55  ;;  %v6840_v55 = vld [vmem:[%s9006_s6 + $0x1cc] ss:$12 sps:$4 sm:$0xff]  }
 0x41f   : > { %6245 = vmatprep.subr.bf16.mxu0 %v7058_v1 }
 0x420   : > { %4996 = vmatpush1.bf16.msra.mxu1 %v6794_v56 }
 0x421   : > { %3439 = vmatmul.mubr.bf16.vlgmr.msra.gmra.mxu0 %v7770_v32  ;;  %4997 = vmatprep.subr.bf16.mxu1 %v6800_v57  ;;  %v6802_v32 = vld [vmem:[%s9006_s6 + $0x150] ss:$12 sps:$4 sm:$0xff]   ;;  %v6850_v57 = vld [vmem:[%s9006_s6 + $0x3a8] ss:$12 sps:$4 sm:$0xff]  }
 0x422   : > { %6246 = vmatpush3.bf16.msra.mxu0 %v6785_v58  ;;  %6261 = vmatprep.mubr.msk.bf16.mxu0 %vm7059_vm0, %v7058_v1 }
 0x423   : > { %6247 = vmatprep.subr.bf16.mxu0 %v7058_v1  ;;  %v3182_v16 = vpop.f32.mrf.mxu1 }
 0x424   : > { %4998 = vmatpush2.bf16.msra.mxu1 %v6798_v59  ;;  %v3183_v41 = vadd.f32 %v3182_v16, %v2002_v33  ;;  %v6858_v59 = vld [vmem:[%s9006_s6 + $0x394] ss:$12 sps:$4 sm:$0xff]  }
 0x425   : > { %4999 = vmatprep.subr.bf16.mxu1 %v6804_v60  ;;  %v3184_v20 = vpop.f32.mrf.mxu1  ;;  %v6838_v60 = vld [vmem:[%s9006_s6 + $0x1c8] ss:$12 sps:$4 sm:$0xff]  }
 0x426   : > { %6248 = vmatpush3.bf16.msra.mxu0 %v6789_v30  ;;  %v3185_v39 = vadd.f32 %v3184_v20, %v2006_v31  ;;  %v6843_v30 = vld [vmem:[%s9006_s6 + $0x1b4] ss:$12 sps:$4 sm:$0xff]   ;;  %v6867_v20 = vld [vmem:[%s9006_s6 + $0x2bc] ss:$12 sps:$4 sm:$0xff]  }
 0x427   : > { %6249 = vmatprep.subr.bf16.mxu0 %v7058_v1  ;;  %v3186_v28 = vpop.f32.mrf.mxu1  ;;  %v6861_v16 = vld [vmem:[%s9006_s6 + $0x2d4] ss:$12 sps:$4 sm:$0xff]  }
 0x428   : > { %5000 = vmatpush2.bf16.msra.mxu1 %v6802_v32  ;;  %v3187_v40 = vadd.f32 %v3186_v28, %v2002_v33  ;;  %v6856_v32 = vld [vmem:[%s9006_s6 + $0x390] ss:$12 sps:$4 sm:$0xff]   ;;  %v6892_v28 = vld [vmem:[%s9006_s6 + $0x300] ss:$12 sps:$4 sm:$0xff]  }
 0x429   : > { %5001 = vmatprep.subr.bf16.mxu1 %v6808_v61  ;;  %v3188_v36 = vpop.f32.mrf.mxu1  ;;  %v6864_v61 = vld [vmem:[%s9006_s6 + $0x37c] ss:$12 sps:$4 sm:$0xff]   ;;  %v6879_v33 = vld [vmem:[%s9006_s6 + $0x28c] ss:$12 sps:$4 sm:$0xff]  }
 0x42a   : > { %6250 = vmatpush3.bf16.msra.mxu0 %v6793_v62  ;;  %v3189_v43 = vadd.f32 %v3188_v36, %v2006_v31  ;;  %v6841_v62 = vld [vmem:[%s9006_s6 + $0x1b0] ss:$12 sps:$4 sm:$0xff]   ;;  %v6871_v31 = vld [vmem:[%s9006_s6 + $0x2a0] ss:$12 sps:$4 sm:$0xff]   ;;  %v6877_v36 = vld [vmem:[%s9006_s6 + $0x288] ss:$12 sps:$4 sm:$0xff]  }
 0x42b   : > { %6251 = vmatprep.subr.bf16.mxu0 %v7058_v1 }
 0x42c   : > { %5002 = vmatpush2.bf16.msra.mxu1 %v6806_v63  ;;  %v6846_v63 = vld [vmem:[%s9006_s6 + $0x19c] ss:$12 sps:$4 sm:$0xff]  }
 0x42d   : > { %5003 = vmatprep.subr.bf16.mxu1 %v6812_v0  ;;  %v6862_v0 = vld [vmem:[%s9006_s6 + $0x378] ss:$12 sps:$4 sm:$0xff]  }
 0x42e   : > { %6252 = vmatpush3.bf16.msra.mxu0 %v6797_v2  ;;  %v6870_v2 = vld [vmem:[%s9006_s6 + $0x364] ss:$12 sps:$4 sm:$0xff]  }
 0x42f   : > { %6253 = vmatprep.subr.bf16.mxu0 %v7058_v1 }
 0x430   : > { %5004 = vmatpush2.bf16.msra.mxu1 %v6810_v4  ;;  %v6844_v4 = vld [vmem:[%s9006_s6 + $0x198] ss:$12 sps:$4 sm:$0xff]  }
 0x431   : > { %5005 = vmatprep.subr.bf16.mxu1 %v6816_v5  ;;  %v6849_v5 = vld [vmem:[%s9006_s6 + $0x184] ss:$12 sps:$4 sm:$0xff]  }
 0x432   : > { %6254 = vmatpush3.bf16.msra.mxu0 %v6801_v6  ;;  %v6868_v6 = vld [vmem:[%s9006_s6 + $0x360] ss:$12 sps:$4 sm:$0xff]  }
 0x433   : > { %6255 = vmatprep.subr.bf16.mxu0 %v7058_v1 }
 0x434   : > { %5006 = vmatpush2.bf16.msra.mxu1 %v6814_v7  ;;  %v6876_v7 = vld [vmem:[%s9006_s6 + $0x34c] ss:$12 sps:$4 sm:$0xff]  }
 0x435   : > { %5007 = vmatprep.subr.bf16.mxu1 %v6819_v8  ;;  %v6847_v8 = vld [vmem:[%s9006_s6 + $0x180] ss:$12 sps:$4 sm:$0xff]  }
 0x436   : > { %6256 = vmatpush3.bf16.msra.mxu0 %v6805_v9  ;;  %v6855_v9 = vld [vmem:[%s9006_s6 + $0x2ec] ss:$12 sps:$4 sm:$0xff]  }
 0x437   : > { %6257 = vmatprep.subr.bf16.mxu0 %v7058_v1 }
 0x438   : > { %5008 = vmatpush2.bf16.msra.mxu1 %v6817_v10  ;;  %v6874_v10 = vld [vmem:[%s9006_s6 + $0x348] ss:$12 sps:$4 sm:$0xff]  }
 0x439   : > { %5009 = vmatprep.subr.bf16.mxu1 %v6822_v11  ;;  %v6882_v11 = vld [vmem:[%s9006_s6 + $0x334] ss:$12 sps:$4 sm:$0xff]  }
 0x43a   : > { %6258 = vmatpush3.bf16.msra.mxu0 %v6809_v12  ;;  %v6853_v12 = vld [vmem:[%s9006_s6 + $0x2e8] ss:$12 sps:$4 sm:$0xff]  }
 0x43b   : > { %6259 = vmatprep.subr.bf16.mxu0 %v7058_v1 }
 0x43c   : > { %5010 = vmatpush2.bf16.msra.mxu1 %v6820_v17  ;;  %v6880_v17 = vld [vmem:[%s9006_s6 + $0x330] ss:$12 sps:$4 sm:$0xff]  }
 0x43d   : > { %5011 = vmatprep.subr.bf16.mxu1 %v6825_v18  ;;  %v6888_v18 = vld [vmem:[%s9006_s6 + $0x31c] ss:$12 sps:$4 sm:$0xff]  }
 0x43e   : > { %6260 = vmatpush3.bf16.msra.mxu0 %v6813_v19  ;;  %v6859_v19 = vld [vmem:[%s9006_s6 + $0x2d0] ss:$12 sps:$4 sm:$0xff]  }
 0x43f   : > { %5024 = vmatprep.subr.bf16.mxu0 %v6828_v22  ;;  %v6886_v22 = vld [vmem:[%s9006_s6 + $0x318] ss:$12 sps:$4 sm:$0xff]  }
 0x440   : > { %5012 = vmatpush2.bf16.msra.mxu1 %v6823_v23  ;;  %v6894_v23 = vld [vmem:[%s9006_s6 + $0x304] ss:$12 sps:$4 sm:$0xff]  }
 0x441   : > { %6262 = vmatmul.mubr.bf16.vlgmr.msra.gmra.mxu0 %v7824_v3  ;;  %v3225_v34 = vpop.f32.mrf.mxu0  ;;  %5067 = vmatprep.subr.bf16.mxu1 %v6852_v24  ;;  %v6865_v24 = vld [vmem:[%s9006_s6 + $0x2b8] ss:$12 sps:$4 sm:$0xff]  }
 0x442   : > { %5025 = vmatpush1.bf16.msra.mxu0 %v6826_v27  ;;  %v3226_v46 = vadd.f32 %v3225_v34, %v3183_v41  ;;  %v6873_v27 = vld [vmem:[%s9006_s6 + $0x2a4] ss:$12 sps:$4 sm:$0xff]   ;;  %v6898_v34 = vld [vmem:[%s9006_s6 + $0x468] ss:$12 sps:$4 sm:$0xff]  }
 0x443   : > { %v3227_v37 = vpop.f32.mrf.mxu0  ;;  %5026 = vmatprep.subr.bf16.mxu0 %v6831_v29  ;;  %v6900_v29 = vld [vmem:[%s9006_s6 + $0x46c] ss:$12 sps:$4 sm:$0xff]   ;;  %v6891_v41 = vld [vmem:[%s9006_s6 + $0x25c] ss:$12 sps:$4 sm:$0xff]  }
 0x444   : > { %v3228_v3 = vadd.f32 %v3227_v37, %v3185_v39  ;;  %v3574_v54 = vmax.f32 %v3226_v46, 0.0  ;;  %v6885_v37 = vld [vmem:[%s9006_s6 + $0x274] ss:$12 sps:$4 sm:$0xff]   ;;  %v6906_v39 = vld [vmem:[%s9006_s6 + $0x43c] ss:$12 sps:$4 sm:$0xff]  }
 0x445   : > { %v3229_v42 = vpop.f32.mrf.mxu0  ;;  %v6912_v46 = vld [vmem:[%s9006_s6 + $0x40c] ss:$12 sps:$4 sm:$0xff]  }
 0x446   : > { %v3230_v44 = vadd.f32 %v3229_v42, %v3187_v40  ;;  %5027 = vmatpush1.bf16.msra.mxu0 %v6829_v35  ;;  %v3575_v51 = vmax.f32 %v3228_v3, 0.0  ;;  %v6903_v35 = vld [vmem:[%s9006_s6 + $0x454] ss:$12 sps:$4 sm:$0xff]   ;;  %v6883_v40 = vld [vmem:[%s9006_s6 + $0x270] ss:$12 sps:$4 sm:$0xff]  }
 0x447   : > { %v3231_v47 = vpop.f32.mrf.mxu0  ;;  %5028 = vmatprep.subr.bf16.mxu0 %v6834_v38  ;;  %v6901_v38 = vld [vmem:[%s9006_s6 + $0x450] ss:$12 sps:$4 sm:$0xff]   ;;  %v6904_v42 = vld [vmem:[%s9006_s6 + $0x438] ss:$12 sps:$4 sm:$0xff]  }
 0x448   : > { %v3232_v49 = vadd.f32 %v3231_v47, %v3189_v43  ;;  %v3583_v50 = vmax.f32 %v3230_v44, 0.0  ;;  %v6909_v43 = vld [vmem:[%s9006_s6 + $0x424] ss:$12 sps:$4 sm:$0xff]   ;;  %v6895_v47 = vld [vmem:[%s9006_s6 + $0x240] ss:$12 sps:$4 sm:$0xff]  }
 0x449   : > { %v6889_v3 = vld [vmem:[%s9006_s6 + $0x258] ss:$12 sps:$4 sm:$0xff]  }
 0x44a   : > { %v3584_v52 = vmax.f32 %v3232_v49, 0.0  ;;  %5029 = vmatpush1.bf16.msra.mxu0 %v6832_v45  ;;  %v8438_v58 = vpack.c.bf16 %v3583_v50, %v3574_v54  ;;  %v6897_v44 = vld [vmem:[%s9006_s6 + $0x244] ss:$12 sps:$4 sm:$0xff]   ;;  %v6907_v45 = vld [vmem:[%s9006_s6 + $0x420] ss:$12 sps:$4 sm:$0xff]   ;;  %v2013_v49 = vsub.s32 3, %v7360_v13 }
 0x44b   : > { %5030 = vmatprep.subr.bf16.mxu0 %v6837_v48  ;;  %v6924_v48 = vld [vmem:[%s9006_s6 + $0x52c] ss:$12 sps:$4 sm:$0xff]   ;;  %v6910_v50 = vld [vmem:[%s9006_s6 + $0x408] ss:$12 sps:$4 sm:$0xff]   ;;  %v6913_v54 = vld [vmem:[%s9006_s6 + $0x3f0] ss:$12 sps:$4 sm:$0xff]  }
 0x44c   : > { %v8433_v56 = vpack.c.bf16 %v3584_v52, %v3575_v51  ;;  %v3311_v51 = vpop.f32.mrf.mxu1  ;;  %v6915_v52 = vld [vmem:[%s9006_s6 + $0x3f4] ss:$12 sps:$4 sm:$0xff]  }
 0x44e   : > { %5013 = vmatprep.mubr.bf16.mxu1 %v8433_v56  ;;  %5031 = vmatpush1.bf16.msra.mxu0 %v6835_v53  ;;  %v2014_v53 = vrot.slane %v8402_v25, %v2013_v49 }
 0x44f   : > { %5014 = vmatmul.mubr.bf16.vlgmr.msra.gmra.mxu1 %v8438_v58  ;;  %5032 = vmatprep.subr.bf16.mxu0 %v6840_v55  ;;  %v3313_v55 = vpop.f32.mrf.mxu1 }
 0x450   : > { %5068 = vmatpush1.bf16.msra.mxu1 %v6850_v57  ;;  %v2010_v57 = vrot.slane %v8402_v25, %v7519_v21 }
 0x451   : > { %5069 = vmatprep.subr.bf16.mxu1 %v6858_v59 }
 0x452   : > { %5033 = vmatpush1.bf16.msra.mxu0 %v6838_v60  ;;  %v6918_v60 = vld [vmem:[%s9006_s6 + $0x3dc] ss:$12 sps:$4 sm:$0xff]  }
 0x453   : > { %5034 = vmatprep.subr.bf16.mxu0 %v6843_v30 }
 0x454   : > { %5070 = vmatpush1.bf16.msra.mxu1 %v6856_v32 }
 0x455   : > { %5071 = vmatprep.subr.bf16.mxu1 %v6864_v61  ;;  %v6916_v61 = vld [vmem:[%s9006_s6 + $0x3d8] ss:$12 sps:$4 sm:$0xff]  }
 0x456   : > { %5035 = vmatpush1.bf16.msra.mxu0 %v6841_v62  ;;  %v3315_v62 = vpop.f32.mrf.mxu1 }
 0x457   : > { %5036 = vmatprep.subr.bf16.mxu0 %v6846_v63 }
 0x458   : > { %5072 = vmatpush1.bf16.msra.mxu1 %v6862_v0 }
 0x459   : > { %5073 = vmatprep.subr.bf16.mxu1 %v6870_v2  ;;  %v6921_v2 = vld [vmem:[%s9006_s6 + $0x3c4] ss:$12 sps:$4 sm:$0xff]  }
 0x45a   : > { %5037 = vmatpush1.bf16.msra.mxu0 %v6844_v4 }
 0x45b   : > { %5038 = vmatprep.subr.bf16.mxu0 %v6849_v5 }
 0x45c   : > { %5074 = vmatpush1.bf16.msra.mxu1 %v6868_v6 }
 0x45d   : > { %5075 = vmatprep.subr.bf16.mxu1 %v6876_v7 }
 0x45e   : > { %5039 = vmatpush1.bf16.msra.mxu0 %v6847_v8 }
 0x45f   : > { %5040 = vmatprep.subr.bf16.mxu0 %v6855_v9  ;;  %v6919_v9 = vld [vmem:[%s9006_s6 + $0x3c0] ss:$12 sps:$4 sm:$0xff]  }
 0x460   : > { %5076 = vmatpush1.bf16.msra.mxu1 %v6874_v10  ;;  %v3317_v10 = vpop.f32.mrf.mxu1 }
 0x461   : > { %5077 = vmatprep.subr.bf16.mxu1 %v6882_v11 }
 0x462   : > { %5041 = vmatpush2.bf16.msra.mxu0 %v6853_v12  ;;  %v6978_v12 = vld [vmem:[%s9006_s6 + $0x64c] ss:$12 sps:$4 sm:$0xff]  }
 0x463   : > { %5042 = vmatprep.subr.bf16.mxu0 %v6861_v16 }
 0x464   : > { %5078 = vmatpush1.bf16.msra.mxu1 %v6880_v17 }
 0x465   : > { %5079 = vmatprep.subr.bf16.mxu1 %v6888_v18 }
 0x466   : > { %5043 = vmatpush2.bf16.msra.mxu0 %v6859_v19 }
 0x467   : > { %5044 = vmatprep.subr.bf16.mxu0 %v6867_v20 }
 0x468   : > { %5080 = vmatpush1.bf16.msra.mxu1 %v6886_v22 }
 0x469   : > { %5081 = vmatprep.subr.bf16.mxu1 %v6894_v23  ;;  %v6922_v23 = vld [vmem:[%s9006_s6 + $0x528] ss:$12 sps:$4 sm:$0xff]  }
 0x46a   : > { %5045 = vmatpush2.bf16.msra.mxu0 %v6865_v24 }
 0x46b   : > { %5046 = vmatprep.subr.bf16.mxu0 %v6873_v27  ;;  %v6927_v27 = vld [vmem:[%s9006_s6 + $0x514] ss:$12 sps:$4 sm:$0xff]  }
 0x46c   : > { %5082 = vmatpush1.bf16.msra.mxu1 %v6892_v28  ;;  %v6925_v28 = vld [vmem:[%s9006_s6 + $0x510] ss:$12 sps:$4 sm:$0xff]  }
 0x46d   : > { %5083 = vmatprep.subr.bf16.mxu1 %v6900_v29  ;;  %v6930_v29 = vld [vmem:[%s9006_s6 + $0x4fc] ss:$12 sps:$4 sm:$0xff]  }
 0x46e   : > { %5047 = vmatpush2.bf16.msra.mxu0 %v6871_v31  ;;  %v6928_v31 = vld [vmem:[%s9006_s6 + $0x4f8] ss:$12 sps:$4 sm:$0xff]  }
 0x46f   : > { %5048 = vmatprep.subr.bf16.mxu0 %v6879_v33 }
 0x470   : > { %5084 = vmatpush2.bf16.msra.mxu1 %v6898_v34  ;;  %v6933_v34 = vld [vmem:[%s9006_s6 + $0x4e4] ss:$12 sps:$4 sm:$0xff]  }
 0x471   : > { %5085 = vmatprep.subr.bf16.mxu1 %v6903_v35  ;;  %v6931_v35 = vld [vmem:[%s9006_s6 + $0x4e0] ss:$12 sps:$4 sm:$0xff]  }
 0x472   : > { %5049 = vmatpush2.bf16.msra.mxu0 %v6877_v36 }
 0x473   : > { %5050 = vmatprep.subr.bf16.mxu0 %v6885_v37  ;;  %v6936_v37 = vld [vmem:[%s9006_s6 + $0x4cc] ss:$12 sps:$4 sm:$0xff]  }
 0x474   : > { %5086 = vmatpush2.bf16.msra.mxu1 %v6901_v38  ;;  %v2021_v38 = vsub.s32 5, %v7360_v13 }
 0x475   : > { %5087 = vmatprep.subr.bf16.mxu1 %v6906_v39  ;;  %v2017_v39 = vsub.s32 4, %v7360_v13 }
 0x476   : > { %5051 = vmatpush2.bf16.msra.mxu0 %v6883_v40  ;;  %v6934_v40 = vld [vmem:[%s9006_s6 + $0x4c8] ss:$12 sps:$4 sm:$0xff]  }
 0x477   : > { %5052 = vmatprep.subr.bf16.mxu0 %v6891_v41 }
 0x478   : > { %5088 = vmatpush2.bf16.msra.mxu1 %v6904_v42  ;;  %v6939_v42 = vld [vmem:[%s9006_s6 + $0x4b4] ss:$12 sps:$4 sm:$0xff]  }
 0x479   : > { %5089 = vmatprep.subr.bf16.mxu1 %v6909_v43  ;;  %v2022_v43 = vrot.slane %v8402_v25, %v2021_v38  ;;  %v6967_v38 = vld [vmem:[%s9006_s6 + $0x540] ss:$12 sps:$4 sm:$0xff]  }
 0x47a   : > { %5053 = vmatpush2.bf16.msra.mxu0 %v6889_v3  ;;  %v2018_v3 = vrot.slane %v8402_v25, %v2017_v39  ;;  %v6970_v39 = vld [vmem:[%s9006_s6 + $0x2f0] ss:$12 sps:$4 sm:$0xff]  }
 0x47b   : > { %5054 = vmatprep.subr.bf16.mxu0 %v6897_v44 }
 0x47c   : > { %5090 = vmatpush2.bf16.msra.mxu1 %v6907_v45  ;;  %v6937_v45 = vld [vmem:[%s9006_s6 + $0x4b0] ss:$12 sps:$4 sm:$0xff]  }
 0x47d   : > { %5091 = vmatprep.subr.bf16.mxu1 %v6912_v46 }
 0x47e   : > { %5055 = vmatpush2.bf16.msra.mxu0 %v6895_v47 }
 0x47f   : > { %5110 = vmatprep.subr.bf16.mxu0 %v6924_v48  ;;  %v6942_v48 = vld [vmem:[%s9006_s6 + $0x49c] ss:$12 sps:$4 sm:$0xff]  }
 0x480   : > { %5092 = vmatpush2.bf16.msra.mxu1 %v6910_v50 }
 0x481   : > { %v3268_v59 = vpop.f32.mrf.mxu0  ;;  %5093 = vmatprep.subr.bf16.mxu1 %v6915_v52 }
 0x482   : > { %v3269_v63 = vadd.f32 %v3268_v59, %v2010_v57 }
 0x483   : > { %v3270_v30 = vpop.f32.mrf.mxu0  ;;  %v3354_v33 = vpop.f32.mrf.mxu1 }
 0x484   : > { %v3271_v32 = vadd.f32 %v3270_v30, %v2014_v53  ;;  %5094 = vmatpush2.bf16.msra.mxu1 %v6913_v54  ;;  %v3312_v11 = vadd.f32 %v3311_v51, %v3269_v63  ;;  %v3355_v51 = vadd.f32 %v3354_v33, %v2018_v3  ;;  %v6945_v30 = vld [vmem:[%s9006_s6 + $0x484] ss:$12 sps:$4 sm:$0xff]   ;;  %v6963_v33 = vld [vmem:[%s9006_s6 + $0x574] ss:$12 sps:$4 sm:$0xff]  }
 0x485   : > { %v3272_v0 = vpop.f32.mrf.mxu0  ;;  %5095 = vmatprep.subr.bf16.mxu1 %v6918_v60  ;;  %v3356_v36 = vpop.f32.mrf.mxu1 }
 0x486   : > { %v3273_v4 = vadd.f32 %v3272_v0, %v2010_v57  ;;  %v3314_v6 = vadd.f32 %v3313_v55, %v3271_v32  ;;  %v3576_v20 = vmax.f32 %v3312_v11, 0.0  ;;  %v3357_v49 = vadd.f32 %v3356_v36, %v2022_v43  ;;  %v6940_v57 = vld [vmem:[%s9006_s6 + $0x498] ss:$12 sps:$4 sm:$0xff]   ;;  %v6943_v0 = vld [vmem:[%s9006_s6 + $0x480] ss:$12 sps:$4 sm:$0xff]  }
 0x487   : > { %v3274_v5 = vpop.f32.mrf.mxu0  ;;  %v3358_v41 = vpop.f32.mrf.mxu1  ;;  %v6981_v11 = vld [vmem:[%s9006_s6 + $0x630] ss:$12 sps:$4 sm:$0xff]   ;;  %v6964_v36 = vld [vmem:[%s9006_s6 + $0x558] ss:$12 sps:$4 sm:$0xff]  }
 0x488   : > { %v3316_v7 = vadd.f32 %v3315_v62, %v3273_v4  ;;  %v3275_v8 = vadd.f32 %v3274_v5, %v2014_v53  ;;  %5096 = vmatpush2.bf16.msra.mxu1 %v6916_v61  ;;  %v3577_v18 = vmax.f32 %v3314_v6, 0.0  ;;  %v3359_v50 = vadd.f32 %v3358_v41, %v2018_v3  ;;  %v6948_v4 = vld [vmem:[%s9006_s6 + $0x5ec] ss:$12 sps:$4 sm:$0xff]   ;;  %v6976_v6 = vld [vmem:[%s9006_s6 + $0x648] ss:$12 sps:$4 sm:$0xff]  }
 0x489   : > { %5097 = vmatprep.subr.bf16.mxu1 %v6921_v2  ;;  %v3360_v46 = vpop.f32.mrf.mxu1 }
 0x48a   : > { %v3318_v16 = vadd.f32 %v3317_v10, %v3275_v8  ;;  %v3585_v17 = vmax.f32 %v3316_v7, 0.0  ;;  %v3361_v53 = vadd.f32 %v3360_v46, %v2022_v43  ;;  %v6983_v8 = vld [vmem:[%s9006_s6 + $0x634] ss:$12 sps:$4 sm:$0xff]  }
 0x48b   : > { %v6951_v10 = vld [vmem:[%s9006_s6 + $0x5d4] ss:$12 sps:$4 sm:$0xff]  }
 0x48c   : > { %v3586_v19 = vmax.f32 %v3318_v16, 0.0  ;;  %5098 = vmatpush2.bf16.msra.mxu1 %v6919_v9  ;;  %v8616_v24 = vpack.c.bf16 %v3585_v17, %v3576_v20  ;;  %v6946_v9 = vld [vmem:[%s9006_s6 + $0x5e8] ss:$12 sps:$4 sm:$0xff]   ;;  %v6949_v16 = vld [vmem:[%s9006_s6 + $0x5d0] ss:$12 sps:$4 sm:$0xff]  }
 0x48d   : > { %5161 = vmatprep.subr.bf16.mxu1 %v6978_v12  ;;  %v6988_v12 = vld [vmem:[%s9006_s6 + $0x61c] ss:$12 sps:$4 sm:$0xff]   ;;  %v6957_v20 = vld [vmem:[%s9006_s6 + $0x5a4] ss:$12 sps:$4 sm:$0xff]  }
 0x48e   : > { %v8611_v22 = vpack.c.bf16 %v3586_v19, %v3577_v18  ;;  %v6954_v17 = vld [vmem:[%s9006_s6 + $0x5bc] ss:$12 sps:$4 sm:$0xff]   ;;  %v6993_v18 = vld [vmem:[%s9006_s6 + $0x604] ss:$12 sps:$4 sm:$0xff]  }
 0x48f   : > { %v6952_v19 = vld [vmem:[%s9006_s6 + $0x5b8] ss:$12 sps:$4 sm:$0xff]  }
 0x490   : > { %5056 = vmatprep.mubr.bf16.mxu0 %v8611_v22 }
 0x491   : > { %5057 = vmatmul.mubr.bf16.vlgmr.msra.gmra.mxu0 %v8616_v24 }
 0x492   : > { %5111 = vmatpush1.bf16.msra.mxu0 %v6922_v23  ;;  %v6991_v23 = vld [vmem:[%s9006_s6 + $0x600] ss:$12 sps:$4 sm:$0xff]  }
 0x493   : > { %5112 = vmatprep.subr.bf16.mxu0 %v6927_v27  ;;  %v6996_v27 = vld [vmem:[%s9006_s6 + $0x170] ss:$12 sps:$4 sm:$0xff]  }
 0x496   : > { %5113 = vmatpush1.bf16.msra.mxu0 %v6925_v28  ;;  %v6955_v28 = vld [vmem:[%s9006_s6 + $0x5a0] ss:$12 sps:$4 sm:$0xff]  }
 0x497   : > { %5114 = vmatprep.subr.bf16.mxu0 %v6930_v29  ;;  %v6960_v29 = vld [vmem:[%s9006_s6 + $0x58c] ss:$12 sps:$4 sm:$0xff]  }
 0x49a   : > { %5115 = vmatpush1.bf16.msra.mxu0 %v6928_v31  ;;  %v6958_v31 = vld [vmem:[%s9006_s6 + $0x588] ss:$12 sps:$4 sm:$0xff]  }
 0x49b   : > { %5116 = vmatprep.subr.bf16.mxu0 %v6933_v34  ;;  %v6961_v34 = vld [vmem:[%s9006_s6 + $0x570] ss:$12 sps:$4 sm:$0xff]  }
 0x49e   : > { %5117 = vmatpush1.bf16.msra.mxu0 %v6931_v35  ;;  %v6966_v35 = vld [vmem:[%s9006_s6 + $0x55c] ss:$12 sps:$4 sm:$0xff]  }
 0x49f   : > { %5118 = vmatprep.subr.bf16.mxu0 %v6936_v37  ;;  %v6969_v37 = vld [vmem:[%s9006_s6 + $0x544] ss:$12 sps:$4 sm:$0xff]  }
 0x4a1   : > { %v3397_v44 = vpop.f32.mrf.mxu0 }
 0x4a2   : > { %5119 = vmatpush1.bf16.msra.mxu0 %v6934_v40  ;;  %v3398_v59 = vadd.f32 %v3397_v44, %v3355_v51  ;;  %v2029_v40 = vsub.s32 7, %v7360_v13 }
 0x4a3   : > { %v3399_v47 = vpop.f32.mrf.mxu0  ;;  %5120 = vmatprep.subr.bf16.mxu0 %v6939_v42  ;;  %v3483_v41 = vpop.f32.mrf.mxu1  ;;  %v2025_v42 = vsub.s32 6, %v7360_v13 }
 0x4a4   : > { %v3400_v54 = vadd.f32 %v3399_v47, %v3357_v49  ;;  %v3578_v2 = vmax.f32 %v3398_v59, 0.0  ;;  %v2030_v43 = vrot.slane %v8402_v25, %v2029_v40 }
 0x4a5   : > { %v3401_v52 = vpop.f32.mrf.mxu0  ;;  %v3485_v3 = vpop.f32.mrf.mxu1  ;;  %v2026_v44 = vrot.slane %v8402_v25, %v2025_v42  ;;  %v6971_v25 = vld [vmem:[%s9006_s6 + $0x230] ss:$12 sps:$4 sm:$0xff]  }
 0x4a6   : > { %v3402_v55 = vadd.f32 %v3401_v52, %v3359_v50  ;;  %5121 = vmatpush1.bf16.msra.mxu0 %v6937_v45  ;;  %v3579_v62 = vmax.f32 %v3400_v54, 0.0  ;;  %v6997_v42 = vld [vmem:[%s9006_s6 + $0xb0] ss:$12 sps:$4 sm:$0xff]  }
 0x4a7   : > { %v3403_v60 = vpop.f32.mrf.mxu0  ;;  %5122 = vmatprep.subr.bf16.mxu0 %v6942_v48  ;;  %v3487_v48 = vpop.f32.mrf.mxu1 }
 0x4a8   : > { %v3404_v32 = vadd.f32 %v3403_v60, %v3361_v53  ;;  %v3587_v61 = vmax.f32 %v3402_v55, 0.0 }
 0x4aa   : > { %v3588_v63 = vmax.f32 %v3404_v32, 0.0  ;;  %5123 = vmatpush1.bf16.msra.mxu0 %v6940_v57  ;;  %v8674_v7 = vpack.c.bf16 %v3587_v61, %v3578_v2  ;;  %v3489_v57 = vpop.f32.mrf.mxu1 }
 0x4ab   : > { %5124 = vmatprep.subr.bf16.mxu0 %v6945_v30 }
 0x4ac   : > { %v8669_v5 = vpack.c.bf16 %v3588_v63, %v3579_v62 }
 0x4ae   : > { %5099 = vmatprep.mubr.bf16.mxu1 %v8669_v5  ;;  %5125 = vmatpush1.bf16.msra.mxu0 %v6943_v0  ;;  %v6972_v0 = vld [vmem:[%s9006_s6 + $0x2d8] ss:$12 sps:$4 sm:$0xff]  }
 0x4af   : > { %5100 = vmatmul.mubr.bf16.vlgmr.msra.gmra.mxu1 %v8674_v7  ;;  %5126 = vmatprep.subr.bf16.mxu0 %v6948_v4  ;;  %v6973_v4 = vld [vmem:[%s9006_s6 + $0x218] ss:$12 sps:$4 sm:$0xff]  }
 0x4b0   : > { %5162 = vmatpush1.bf16.msra.mxu1 %v6976_v6  ;;  %5185 = vmatprep.mubr.bf16.mxu1 %v7060_v26  ;;  %v6986_v26 = vld [vmem:[%s9006_s6 + $0x618] ss:$12 sps:$4 sm:$0xff]   ;;  %v6974_v6 = vld [vmem:[%s9006_s6 + $0x2c0] ss:$12 sps:$4 sm:$0xff]  }
 0x4b1   : > { %5163 = vmatprep.subr.bf16.mxu1 %v6983_v8 }
 0x4b2   : > { %5127 = vmatpush2.bf16.msra.mxu0 %v6946_v9  ;;  %v6975_v9 = vld [vmem:[%s9006_s6 + $0x200] ss:$12 sps:$4 sm:$0xff]  }
 0x4b3   : > { %5128 = vmatprep.subr.bf16.mxu0 %v6951_v10 }
 0x4b4   : > { %5164 = vmatpush1.bf16.msra.mxu1 %v6981_v11  ;;  %v6980_v11 = vld [vmem:[%s9006_s6 + $0x1e8] ss:$12 sps:$4 sm:$0xff]  }
 0x4b5   : > { %5165 = vmatprep.subr.bf16.mxu1 %v6988_v12  ;;  %v6984_v12 = vld [vmem:[%s9006_s6 + $0x290] ss:$12 sps:$4 sm:$0xff]  }
 0x4b6   : > { %5129 = vmatpush2.bf16.msra.mxu0 %v6949_v16 }
 0x4b7   : > { %5130 = vmatprep.subr.bf16.mxu0 %v6954_v17 }
 0x4b8   : > { %5166 = vmatpush1.bf16.msra.mxu1 %v6986_v26  ;;  %v6985_v26 = vld [vmem:[%s9006_s6 + $0x1d0] ss:$12 sps:$4 sm:$0xff]  }
 0x4b9   : > { %5167 = vmatprep.subr.bf16.mxu1 %v6993_v18  ;;  %v5616_v18 = vld [vmem:[%s9011_s11 + $0x8] ss:$0 sm:$0xff] }
 0x4ba   : > { %5131 = vmatpush2.bf16.msra.mxu0 %v6952_v19  ;;  %v6989_v19 = vld [vmem:[%s9006_s6 + $0x278] ss:$12 sps:$4 sm:$0xff]  }
 0x4bb   : > { %5132 = vmatprep.subr.bf16.mxu0 %v6957_v20 }
 0x4bc   : > { %5168 = vmatpush1.bf16.msra.mxu1 %v6991_v23 }
 0x4bd   : > { %6112 = vmatprep.subr.bf16.mxu1 %v6996_v27 }
 0x4be   : > { %5133 = vmatpush2.bf16.msra.mxu0 %v6955_v28  ;;  %v6990_v28 = vld [vmem:[%s9006_s6 + $0x1b8] ss:$12 sps:$4 sm:$0xff]  }
 0x4bf   : > { %5134 = vmatprep.subr.bf16.mxu0 %v6960_v29 }
 0x4c2   : > { %5135 = vmatpush2.bf16.msra.mxu0 %v6958_v31  ;;  %v6994_v31 = vld [vmem:[%s9006_s6 + $0x260] ss:$12 sps:$4 sm:$0xff]  }
 0x4c3   : > { %5136 = vmatprep.subr.bf16.mxu0 %v6963_v33  ;;  %v6097_v2 = vpop.f32.mrf.mxu1 }
 0x4c5   : > { %v6098_v8 = vpop.f32.mrf.mxu1 }
 0x4c6   : > { %5137 = vmatpush2.bf16.msra.mxu0 %v6961_v34  ;;  %v6099_v17 = vadd.f32 %v6098_v8, %v6097_v2  ;;  %v7024_v2 = vld [vmem:[%s9006_s6 + $0xc8] ss:$12 sps:$4 sm:$0xff]   ;;  %v7027_v8 = vld [vmem:[%s9006_s6 + $0x4a0] ss:$12 sps:$4 sm:$0xff]  }
 0x4c7   : > { %5138 = vmatprep.subr.bf16.mxu0 %v6966_v35  ;;  %v6100_v10 = vpop.f32.mrf.mxu1 }
 0x4c8   : > { %v3527_v27 = vadd.f32 %v6099_v17, %v5616_v18  ;;  %v7034_v17 = vld [vmem:[%s9006_s6 + $0x440] ss:$12 sps:$4 sm:$0xff]  }
 0x4c9   : > { %v6101_v16 = vpop.f32.mrf.mxu1 }
 0x4ca   : > { %5139 = vmatpush2.bf16.msra.mxu0 %v6964_v36  ;;  %v6102_v20 = vadd.f32 %v6101_v16, %v6100_v10  ;;  %v7029_v10 = vld [vmem:[%s9006_s6 + $0x3b0] ss:$12 sps:$4 sm:$0xff]   ;;  %v7033_v16 = vld [vmem:[%s9006_s6 + $0x398] ss:$12 sps:$4 sm:$0xff]  }
 0x4cb   : > { %5140 = vmatprep.subr.bf16.mxu0 %v6969_v37  ;;  %v6995_v37 = vld [vmem:[%s9006_s6 + $0x1a0] ss:$12 sps:$4 sm:$0xff]  }
 0x4cc   : > { %v3530_v34 = vadd.f32 %v6102_v20, %v5616_v18  ;;  %v7038_v18 = vld [vmem:[%s9006_s6 + $0x410] ss:$12 sps:$4 sm:$0xff]   ;;  %v7041_v20 = vld [vmem:[%s9006_s6 + $0x338] ss:$12 sps:$4 sm:$0xff]  }
 0x4ce   : > { %5141 = vmatpush2.bf16.msra.mxu0 %v6967_v38 }
 0x4cf   : > { %6134 = vmatprep.subr.bf16.mxu0 %v6970_v39  ;;  %v6998_v39 = vld [vmem:[%s9006_s6 + $0x248] ss:$12 sps:$4 sm:$0xff]  }
 0x4e1   : > { %v3440_v45 = vpop.f32.mrf.mxu0 }
 0x4e2   : > { %v3441_v49 = vadd.f32 %v3440_v45, %v2026_v44  ;;  %v7002_v45 = vld [vmem:[%s9006_s6 + $0x5f0] ss:$12 sps:$4 sm:$0xff]  }
 0x4e3   : > { %v3442_v46 = vpop.f32.mrf.mxu0 }
 0x4e4   : > { %v3443_v47 = vadd.f32 %v3442_v46, %v2030_v43  ;;  %v3484_v59 = vadd.f32 %v3483_v41, %v3441_v49  ;;  %v7001_v46 = vld [vmem:[%s9006_s6 + $0x98] ss:$12 sps:$4 sm:$0xff]  }
 0x4e5   : > { %v3444_v50 = vpop.f32.mrf.mxu0  ;;  %v7006_v49 = vld [vmem:[%s9006_s6 + $0x5d8] ss:$12 sps:$4 sm:$0xff]  }
 0x4e6   : > { %v3445_v51 = vadd.f32 %v3444_v50, %v2026_v44  ;;  %v3486_v53 = vadd.f32 %v3485_v3, %v3443_v47  ;;  %v3580_v61 = vmax.f32 %v3484_v59, 0.0  ;;  %v6999_v3 = vld [vmem:[%s9006_s6 + $0x188] ss:$12 sps:$4 sm:$0xff]   ;;  %v7000_v44 = vld [vmem:[%s9006_s6 + $0x158] ss:$12 sps:$4 sm:$0xff]  }
 0x4e7   : > { %v3446_v52 = vpop.f32.mrf.mxu0  ;;  %v7003_v47 = vld [vmem:[%s9006_s6 + $0x530] ss:$12 sps:$4 sm:$0xff]   ;;  %v7007_v50 = vld [vmem:[%s9006_s6 + $0x518] ss:$12 sps:$4 sm:$0xff]   ;;  %v7015_v59 = vld [vmem:[%s9006_s6 + $0x4e8] ss:$12 sps:$4 sm:$0xff]  }
 0x4e8   : > { %v3488_v54 = vadd.f32 %v3487_v48, %v3445_v51  ;;  %v3447_v55 = vadd.f32 %v3446_v52, %v2030_v43  ;;  %v3581_v30 = vmax.f32 %v3486_v53, 0.0  ;;  %v7004_v48 = vld [vmem:[%s9006_s6 + $0x140] ss:$12 sps:$4 sm:$0xff]   ;;  %v7008_v51 = vld [vmem:[%s9006_s6 + $0x128] ss:$12 sps:$4 sm:$0xff]  }
 0x4e9   : > { %v7009_v52 = vld [vmem:[%s9006_s6 + $0x68] ss:$12 sps:$4 sm:$0xff]   ;;  %v7011_v53 = vld [vmem:[%s9006_s6 + $0x500] ss:$12 sps:$4 sm:$0xff]  }
 0x4ea   : > { %v3490_v60 = vadd.f32 %v3489_v57, %v3447_v55  ;;  %v3589_v13 = vmax.f32 %v3488_v54, 0.0  ;;  %v7012_v54 = vld [vmem:[%s9006_s6 + $0x110] ss:$12 sps:$4 sm:$0xff]   ;;  %v7014_v55 = vld [vmem:[%s9006_s6 + $0x5a8] ss:$12 sps:$4 sm:$0xff]  }
 0x4eb   : > { %v7013_v57 = vld [vmem:[%s9006_s6 + $0x50] ss:$12 sps:$4 sm:$0xff]  }
 0x4ec   : > { %v3590_v32 = vmax.f32 %v3490_v60, 0.0  ;;  %v8757_v63 = vpack.c.bf16 %v3589_v13, %v3580_v61  ;;  %v7016_v60 = vld [vmem:[%s9006_s6 + $0xf8] ss:$12 sps:$4 sm:$0xff]   ;;  %v7018_v13 = vld [vmem:[%s9006_s6 + $0x590] ss:$12 sps:$4 sm:$0xff]  }
 0x4ed   : > { %v7020_v61 = vld [vmem:[%s9006_s6 + $0xe0] ss:$12 sps:$4 sm:$0xff]  }
 0x4ee   : > { %v8752_v62 = vpack.c.bf16 %v3590_v32, %v3581_v30  ;;  %v7017_v30 = vld [vmem:[%s9006_s6 + $0x38] ss:$12 sps:$4 sm:$0xff]   ;;  %v7019_v32 = vld [vmem:[%s9006_s6 + $0x4d0] ss:$12 sps:$4 sm:$0xff]  }
 0x4f0   : > { %5142 = vmatprep.mubr.bf16.mxu0 %v8752_v62 }
 0x4f1   : > { %5143 = vmatmul.mubr.bf16.vlgmr.msra.gmra.mxu0 %v8757_v63 }
 0x4f2   : > { %6135 = vmatpush3.bf16.msra.mxu0 %v6971_v25  ;;  %5269 = vmatprep.mubr.bf16.mxu0 %v8611_v22  ;;  %v6979_v22 = vld [vmem:[%s9006_s6 + $0x2a8] ss:$12 sps:$4 sm:$0xff]   ;;  %v7021_v25 = vld [vmem:[%s9006_s6 + $0x20] ss:$12 sps:$4 sm:$0xff]  }
 0x4f3   : > { %6136 = vmatprep.subr.bf16.mxu0 %v6972_v0  ;;  %v7023_v0 = vld [vmem:[%s9006_s6 + $0x4b8] ss:$12 sps:$4 sm:$0xff]  }
 0x4f6   : > { %6137 = vmatpush3.bf16.msra.mxu0 %v6973_v4  ;;  %v7026_v4 = vld [vmem:[%s9006_s6 + $0x560] ss:$12 sps:$4 sm:$0xff]  }
 0x4f7   : > { %6138 = vmatprep.subr.bf16.mxu0 %v6974_v6  ;;  %v7025_v6 = vld [vmem:[%s9006_s6 + $0x8] ss:$12 sps:$4 sm:$0xff]  }
 0x4fa   : > { %6139 = vmatpush3.bf16.msra.mxu0 %v6975_v9  ;;  %v7028_v9 = vld [vmem:[%s9006_s6 + $0x470] ss:$12 sps:$4 sm:$0xff]  }
 0x4fb   : > { %6140 = vmatprep.subr.bf16.mxu0 %v6979_v22  ;;  %v7030_v22 = vld [vmem:[%s9006_s6 + $0x548] ss:$12 sps:$4 sm:$0xff]  }
 0x4fe   : > { %6141 = vmatpush3.bf16.msra.mxu0 %v6980_v11  ;;  %v7031_v11 = vld [vmem:[%s9006_s6 + $0x488] ss:$12 sps:$4 sm:$0xff]  }
 0x4ff   : > { %6142 = vmatprep.subr.bf16.mxu0 %v6984_v12  ;;  %v7032_v12 = vld [vmem:[%s9006_s6 + $0x458] ss:$12 sps:$4 sm:$0xff]  }
 0x501   : > { %v3567_v23 = vpop.f32.mrf.mxu0 }
 0x502   : > { %6143 = vmatpush3.bf16.msra.mxu0 %v6985_v26  ;;  %v3568_v33 = vadd.f32 %v3567_v23, %v3527_v27  ;;  %v7037_v26 = vld [vmem:[%s9006_s6 + $0x368] ss:$12 sps:$4 sm:$0xff]   ;;  %v7042_v23 = vld [vmem:[%s9006_s6 + $0x3e0] ss:$12 sps:$4 sm:$0xff]  }
 0x503   : > { %v6263_v29 = vpop.f32.mrf.mxu0  ;;  %6144 = vmatprep.subr.bf16.mxu0 %v6989_v19  ;;  %v7040_v19 = vld [vmem:[%s9006_s6 + $0x3f8] ss:$12 sps:$4 sm:$0xff]   ;;  %v7043_v27 = vld [vmem:[%s9006_s6 + $0x320] ss:$12 sps:$4 sm:$0xff]  }
 0x504   : > { %v3582_v40 = vmax.f32 %v3568_v33, 0.0  ;;  %v7045_v29 = vld [vmem:[%s9006_s6 + $0x308] ss:$12 sps:$4 sm:$0xff]   ;;  %v7047_v33 = vld [vmem:[%s9006_s6 + $0x638] ss:$12 sps:$4 sm:$0xff]  }
 0x505   : > { %v3570_v35 = vpop.f32.mrf.mxu0 }
 0x506   : > { %v3571_v36 = vadd.f32 %v3570_v35, %v3530_v34  ;;  %6145 = vmatpush3.bf16.msra.mxu0 %v6990_v28  ;;  %v7044_v28 = vld [vmem:[%s9006_s6 + $0x3c8] ss:$12 sps:$4 sm:$0xff]   ;;  %v7048_v34 = vld [vmem:[%s9006_s6 + $0x620] ss:$12 sps:$4 sm:$0xff]  }
 0x507   : > { %v6264_v38 = vpop.f32.mrf.mxu0  ;;  %6146 = vmatprep.subr.bf16.mxu0 %v6994_v31  ;;  %v7046_v31 = vld [vmem:[%s9006_s6 + $0x650] ss:$12 sps:$4 sm:$0xff]  }
 0x508   : > { %v3591_v41 = vmax.f32 %v3571_v36, 0.0 }
 0x50a   : > { %v8807_v43 = vpack.c.bf16 %v3591_v41, %v3582_v40  ;;  %6147 = vmatpush3.bf16.msra.mxu0 %v6995_v37 }
 0x50b   : > { %6148 = vmatprep.subr.bf16.mxu0 %v6998_v39 }
 0x50c   : > { %6037 = vmatmul.mubr.msk.bf16.vlgmr.msra.gmra.mxu1 %vm984_vm1, %v8807_v43 }
 0x50d   : > { %6113 = vmatpush3.bf16.msra.mxu1 %v6997_v42  ;;  %5228 = vmatprep.mubr.bf16.mxu1 %v8433_v56  ;;  %v7005_v56 = vld [vmem:[%s9006_s6 + $0x80] ss:$12 sps:$4 sm:$0xff]  }
 0x50e   : > { %6149 = vmatpush3.bf16.msra.mxu0 %v6999_v3  ;;  %6114 = vmatprep.subr.bf16.mxu1 %v7000_v44  ;;  %v3873_v42 = vld [vmem:[%s9012_s12] sm:$0x7] }
 0x50f   : > { %6178 = vmatprep.subr.bf16.mxu0 %v7002_v45  ;;  %v5015_v35 = vpop.f32.mrf.mxu1 }
 0x511   : > { %6115 = vmatpush3.bf16.msra.mxu1 %v7001_v46  ;;  %5270 = vmatmul.mubr.bf16.vlgmr.msra.gmra.mxu0 %v8616_v24  ;;  %v7010_v24 = vld [vmem:[%s9006_s6 + $0x5c0] ss:$12 sps:$4 sm:$0xff]   ;;  %v5017_v36 = vpop.f32.mrf.mxu1 }
 0x512   : > { %6179 = vmatpush3.bf16.msra.mxu0 %v7003_v47  ;;  %5351 = vmatprep.mubr.bf16.mxu0 %v8752_v62  ;;  %v7022_v62 = vld [vmem:[%s9006_s6 + $0x578] ss:$12 sps:$4 sm:$0xff]  }
 0x513   : > { %6116 = vmatprep.subr.bf16.mxu1 %v7004_v48  ;;  %6180 = vmatprep.subr.bf16.mxu0 %v7006_v49  ;;  %v5019_v38 = vpop.f32.mrf.mxu1 }
 0x515   : > { %6117 = vmatpush3.bf16.msra.mxu1 %v7005_v56  ;;  %v5021_v40 = vpop.f32.mrf.mxu1 }
 0x516   : > { %6181 = vmatpush3.bf16.msra.mxu0 %v7007_v50  ;;  %6118 = vmatprep.subr.bf16.mxu1 %v7008_v51 }
 0x517   : > { %6182 = vmatprep.subr.bf16.mxu0 %v7010_v24 }
 0x519   : > { %6119 = vmatpush3.bf16.msra.mxu1 %v7009_v52 }
 0x51a   : > { %6183 = vmatpush3.bf16.msra.mxu0 %v7011_v53  ;;  %6120 = vmatprep.subr.bf16.mxu1 %v7012_v54 }
 0x51b   : > { %6184 = vmatprep.subr.bf16.mxu0 %v7014_v55 }
 0x51d   : > { %6121 = vmatpush3.bf16.msra.mxu1 %v7013_v57 }
 0x51e   : > { %6185 = vmatpush3.bf16.msra.mxu0 %v7015_v59  ;;  %6122 = vmatprep.subr.bf16.mxu1 %v7016_v60 }
 0x51f   : > { %6186 = vmatprep.subr.bf16.mxu0 %v7018_v13 }
 0x521   : > { %6123 = vmatpush3.bf16.msra.mxu1 %v7017_v30 }
 0x522   : > { %6187 = vmatpush3.bf16.msra.mxu0 %v7019_v32  ;;  %6124 = vmatprep.subr.bf16.mxu1 %v7020_v61 }
 0x523   : > { %6188 = vmatprep.subr.bf16.mxu0 %v7022_v62 }
 0x525   : > { %6125 = vmatpush3.bf16.msra.mxu1 %v7021_v25 }
 0x526   : > { %6189 = vmatpush3.bf16.msra.mxu0 %v7023_v0  ;;  %6126 = vmatprep.subr.bf16.mxu1 %v7024_v2 }
 0x527   : > { %6190 = vmatprep.subr.bf16.mxu0 %v7026_v4 }
 0x529   : > { %6127 = vmatpush3.bf16.msra.mxu1 %v7025_v6 }
 0x52a   : > { %6191 = vmatpush3.bf16.msra.mxu0 %v7027_v8  ;;  %6156 = vmatprep.subr.bf16.mxu1 %v7028_v9 }
 0x52b   : > { %6192 = vmatprep.subr.bf16.mxu0 %v7030_v22 }
 0x52c   : > { %5229 = vmatmul.mubr.bf16.vlgmr.msra.gmra.mxu1 %v8438_v58  ;;  %v7035_v58 = vld [vmem:[%s9006_s6 + $0x380] ss:$12 sps:$4 sm:$0xff]  }
 0x52d   : > { %6157 = vmatpush3.bf16.msra.mxu1 %v7029_v10  ;;  %5310 = vmatprep.mubr.bf16.mxu1 %v8669_v5  ;;  %v7036_v5 = vld [vmem:[%s9006_s6 + $0x428] ss:$12 sps:$4 sm:$0xff]  }
 0x52e   : > { %6193 = vmatpush3.bf16.msra.mxu0 %v7031_v11  ;;  %6158 = vmatprep.subr.bf16.mxu1 %v7032_v12 }
 0x531   : > { %6159 = vmatpush3.bf16.msra.mxu1 %v7033_v16  ;;  %5352 = vmatmul.mubr.bf16.vlgmr.msra.gmra.mxu0 %v8757_v63  ;;  %v7039_v63 = vld [vmem:[%s9006_s6 + $0x350] ss:$12 sps:$4 sm:$0xff]  }
 0x532   : > { %6160 = vmatprep.subr.bf16.mxu1 %v7034_v17 }
 0x535   : > { %6161 = vmatpush3.bf16.msra.mxu1 %v7035_v58 }
 0x536   : > { %6162 = vmatprep.subr.bf16.mxu1 %v7036_v5 }
 0x539   : > { %6163 = vmatpush3.bf16.msra.mxu1 %v7037_v26 }
 0x53a   : > { %6164 = vmatprep.subr.bf16.mxu1 %v7038_v18 }
 0x53d   : > { %6165 = vmatpush3.bf16.msra.mxu1 %v7039_v63 }
 0x53e   : > { %6166 = vmatprep.subr.bf16.mxu1 %v7040_v19 }
 0x541   : > { %6167 = vmatpush3.bf16.msra.mxu1 %v7041_v20 }
 0x542   : > { %6168 = vmatprep.subr.bf16.mxu1 %v7042_v23 }
 0x545   : > { %6169 = vmatpush3.bf16.msra.mxu1 %v7043_v27  ;;  %v3886_v27 = vrot.slane %v3873_v42, %v7519_v21 }
 0x546   : > { %6170 = vmatprep.subr.bf16.mxu1 %v7044_v28 }
 0x549   : > { %6171 = vmatpush3.bf16.msra.mxu1 %v7045_v29 }
 0x54a   : > { %6265 = vmatprep.subr.bf16.mxu1 %v7058_v1 }
 0x54c   : > { %5311 = vmatmul.mubr.bf16.vlgmr.msra.gmra.mxu1 %v8674_v7  ;;  %v7049_v7 = vld [vmem:[%s9006_s6 + $0x608] ss:$12 sps:$4 sm:$0xff]  }
 0x54d   : > { %6266 = vmatpush3.bf16.msra.mxu1 %v7046_v31  ;;  %6273 = vmatprep.mubr.msk.bf16.mxu1 %vm7059_vm0, %v7058_v1 }
 0x54e   : > { %6267 = vmatprep.subr.bf16.mxu1 %v7058_v1 }
 0x551   : > { %6268 = vmatpush3.bf16.msra.mxu1 %v7047_v33  ;;  %v5058_v37 = vpop.f32.mrf.mxu0 }
 0x552   : > { %6269 = vmatprep.subr.bf16.mxu1 %v7058_v1 }
 0x553   : > { %v5060_v39 = vpop.f32.mrf.mxu0 }
 0x555   : > { %6270 = vmatpush3.bf16.msra.mxu1 %v7048_v34  ;;  %v5062_v41 = vpop.f32.mrf.mxu0 }
 0x556   : > { %6271 = vmatprep.subr.bf16.mxu1 %v7058_v1  ;;  %v3878_v1 = vrot.slane %v3873_v42, %v7366_v15 }
 0x557   : > { %v5064_v44 = vpop.f32.mrf.mxu0 }
 0x558   : > { %v5016_v47 = vadd.f32 %v5015_v35, %v3878_v1  ;;  %v5020_v51 = vadd.f32 %v5019_v38, %v3878_v1 }
 0x559   : > { %6272 = vmatpush3.bf16.msra.mxu1 %v7049_v7 }
 0x55a   : > { %v5059_v50 = vadd.f32 %v5058_v37, %v5016_v47  ;;  %v5063_v57 = vadd.f32 %v5062_v41, %v5020_v51 }
 0x55c   : > { %6274 = vmatmul.mubr.msk.bf16.vlgmr.msra.gmra.mxu1 %vm984_vm1, %v8807_v43  ;;  %v3882_v43 = vrot.slane %v3873_v42, %v7363_v14 }
 0x55e   : > { %v5018_v56 = vadd.f32 %v5017_v36, %v3882_v43  ;;  %v5022_v55 = vadd.f32 %v5021_v40, %v3882_v43 }
 0x560   : > { %v5061_v24 = vadd.f32 %v5060_v39, %v5018_v56  ;;  %v5065_v13 = vadd.f32 %v5064_v44, %v5022_v55 }
 0x56f   : > { %v5101_v3 = vpop.f32.mrf.mxu1 }
 0x570   : > { %v5102_v52 = vadd.f32 %v5101_v3, %v5059_v50 }
 0x571   : > { %v5103_v45 = vpop.f32.mrf.mxu1 }
 0x572   : > { %v5104_v59 = vadd.f32 %v5103_v45, %v5061_v24 }
 0x573   : > { %v5105_v48 = vpop.f32.mrf.mxu1 }
 0x574   : > { %v5106_v30 = vadd.f32 %v5105_v48, %v5063_v57 }
 0x575   : > { %v5107_v53 = vpop.f32.mrf.mxu1 }
 0x576   : > { %v5108_v25 = vadd.f32 %v5107_v53, %v5065_v13 }
 0x5b1   : > { %v5144_v46 = vpop.f32.mrf.mxu0 }
 0x5b2   : > { %v5145_v60 = vadd.f32 %v5144_v46, %v5102_v52 }
 0x5b3   : > { %v5146_v49 = vpop.f32.mrf.mxu0 }
 0x5b4   : > { %v5147_v32 = vadd.f32 %v5146_v49, %v5104_v59 }
 0x5b5   : > { %v5148_v54 = vpop.f32.mrf.mxu0 }
 0x5b6   : > { %v5149_v0 = vadd.f32 %v5148_v54, %v5106_v30 }
 0x5b7   : > { %v5150_v61 = vpop.f32.mrf.mxu0 }
 0x5b8   : > { %v5151_v8 = vadd.f32 %v5150_v61, %v5108_v25 }
 0x5cc   : > { %v5187_v15 = vpop.f32.mrf.mxu1 }
 0x5cd   : > { %v5188_v14 = vadd.f32 %v5187_v15, %v5145_v60 }
 0x5ce   : > { %v5189_v62 = vpop.f32.mrf.mxu1 }
 0x5cf   : > { %v5401_v2 = vmax.f32 %v5188_v14, 0.0  ;;  %v5190_v4 = vadd.f32 %v5189_v62, %v5147_v32 }
 0x5d0   : > { %v5191_v6 = vpop.f32.mrf.mxu1 }
 0x5d1   : > { %5407 = vst [vmem:[%s8988_s29] sm:$0xff] %v5401_v2  ;;  %v5402_v9 = vmax.f32 %v5190_v4, 0.0  ;;  %v5192_v22 = vadd.f32 %v5191_v6, %v5149_v0  ;;  %v6150_v58 = vpop.f32.mrf.mxu0 }
 0x5d2   : > { %v5193_v10 = vpop.f32.mrf.mxu1 }
 0x5d3   : > { %5408 = vst [vmem:[%s8988_s29 + $0x8] sm:$0xff] %v5402_v9  ;;  %v5404_v11 = vmax.f32 %v5192_v22, 0.0  ;;  %v5194_v12 = vadd.f32 %v5193_v10, %v5151_v8  ;;  %v6151_v26 = vpop.f32.mrf.mxu0 }
 0x5d4   : > { %v6152_v36 = vadd.f32 %v6151_v26, %v6150_v58 }
 0x5d5   : > { %5410 = vst [vmem:[%s8988_s29 + $0x18] sm:$0xff] %v5404_v11  ;;  %v5405_v16 = vmax.f32 %v5194_v12, 0.0  ;;  %v6153_v63 = vpop.f32.mrf.mxu0 }
 0x5d7   : > { %5411 = vst [vmem:[%s8988_s29 + $0x20] sm:$0xff] %v5405_v16  ;;  %v6154_v20 = vpop.f32.mrf.mxu0 }
 0x5d8   : > { %v6155_v3 = vadd.f32 %v6154_v20, %v6153_v63 }
 0x5ec   : > { %v6128_v17 = vpop.f32.mrf.mxu1 }
 0x5ee   : > { %v6129_v5 = vpop.f32.mrf.mxu1 }
 0x5ef   : > { %v6130_v28 = vadd.f32 %v6129_v5, %v6128_v17 }
 0x5f0   : > { %v6131_v18 = vpop.f32.mrf.mxu1 }
 0x5f1   : > { %v6194_v29 = vpop.f32.mrf.mxu0  ;;  %v5231_v34 = vadd.f32 %v6130_v28, %v3886_v27 }
 0x5f2   : > { %v6132_v19 = vpop.f32.mrf.mxu1 }
 0x5f3   : > { %v6133_v7 = vadd.f32 %v6132_v19, %v6131_v18  ;;  %v6195_v35 = vpop.f32.mrf.mxu0  ;;  %v5272_v40 = vadd.f32 %v6152_v36, %v5231_v34 }
 0x5f4   : > { %v6196_v45 = vadd.f32 %v6195_v35, %v6194_v29 }
 0x5f5   : > { %v5234_v39 = vadd.f32 %v6133_v7, %v3886_v27  ;;  %v6197_v41 = vpop.f32.mrf.mxu0 }
 0x5f7   : > { %v5275_v21 = vadd.f32 %v6155_v3, %v5234_v39  ;;  %v6198_v42 = vpop.f32.mrf.mxu0 }
 0x5f8   : > { %v6199_v48 = vadd.f32 %v6198_v42, %v6197_v41 }
 0x60c   : > { %v6172_v23 = vpop.f32.mrf.mxu1 }
 0x60e   : > { %v6173_v31 = vpop.f32.mrf.mxu1 }
 0x60f   : > { %v6174_v37 = vadd.f32 %v6173_v31, %v6172_v23 }
 0x610   : > { %v6175_v33 = vpop.f32.mrf.mxu1 }
 0x611   : > { %v5313_v44 = vadd.f32 %v6174_v37, %v5272_v40 }
 0x612   : > { %v6176_v38 = vpop.f32.mrf.mxu1 }
 0x613   : > { %v6177_v1 = vadd.f32 %v6176_v38, %v6175_v33  ;;  %v5354_v43 = vadd.f32 %v6196_v45, %v5313_v44 }
 0x615   : > { %v5316_v46 = vadd.f32 %v6177_v1, %v5275_v21 }
 0x617   : > { %v5357_v51 = vadd.f32 %v6199_v48, %v5316_v46 }
 0x61c   : > { %v5394_v47 = vpop.f32.mrf.mxu1 }
 0x61d   : > { %v5395_v49 = vadd.f32 %v5394_v47, %v5354_v43 }
 0x61e   : > { %v6275_v56 = vpop.f32.mrf.mxu1 }
 0x61f   : > { %v5403_v50 = vmax.f32 %v5395_v49, 0.0 }
 0x620   : > { %v5397_v24 = vpop.f32.mrf.mxu1 }
 0x621   : > { %5409 = vst [vmem:[%s8988_s29 + $0x10] sm:$0xff] %v5403_v50  ;;  %v5398_v52 = vadd.f32 %v5397_v24, %v5357_v51 }
 0x622   : > { %v6276_v53 = vpop.f32.mrf.mxu1 }
 0x623   : > { %v5406_v54 = vmax.f32 %v5398_v52, 0.0 }
 0x625   : > { %5412 = vst [vmem:[%s8988_s29 + $0x28] sm:$0xff] %v5406_v54 }
 0x626 PF: > { %s23_s25 = sadd.s32 1, %s7056_s25  }
 0x627   : > { %p20_p4 = scmp.ge.s32.totalorder %s23_s25, 4  }
 0x629   :  { %22 = sbr.rel (!%p20_p4) target bundleno = 1 (0x1), region = 102 }

</bundles_post_ra>
